<compile_context>
chip_gen: v7x
topology: tpu7x:2x2x1
jax: 0.10.0
libtpu: 0.0.40
codegen_flags: <defaults>
</compile_context>

<pallas_src>
import jax
import jax.numpy as jnp
from jax.experimental import pallas as pl
from jax.experimental.pallas import tpu as pltpu


def roadrunner_kernel(x_ref, w1_ref, b1_ref, w2_ref, b_proj_ref, o_ref):
    x = x_ref[...]                                            # [TN, D] bf16

    # Stage 1: one wide MXU pass over the fused [D, 2H] weight.
    #   cols [0:H)  -> fallback pre-activation   x @ W_fc.T
    #   cols [H:2H) -> folded low-rank pre-act   x @ (Vh_fc*S_fc) @ U_fc.T
    pre = jnp.dot(x, w1_ref[...], preferred_element_type=jnp.float32)  # [TN, 2H]

    # Bias + GELU over the whole [TN, 2H] slab (single bias load, single GELU).
    # tanh-GELU in bf16: transcendental goes to the EUP, VALU work is halved.
    h = jax.nn.gelu((pre + b1_ref[...]).astype(jnp.bfloat16), approximate=True)

    # Stage 2: single deep-K dot against the stacked [2H, D] weight.
    #   rows [0:H)  -> (1-alpha) * W_proj.T                 (fallback hidden)
    #   rows [H:2H) -> alpha * Vh_proj.T diag(S_proj) U_proj.T  (low-rank hidden)
    out = (jnp.dot(h, w2_ref[...], preferred_element_type=jnp.float32)
           + b_proj_ref[...])                                 # [TN, D]

    o_ref[...] = out.astype(o_ref.dtype)


def roadrunner_mlp(x, kp, *, tile_n=512):
    """x: [N, D] (any float dtype). kp: pre-folded params from prepare_params().
    Returns bf16 [N, D]."""
    N, D = x.shape
    x = x.astype(jnp.bfloat16)                      # halve activation DMA bytes

    tile_n = min(tile_n, N)
    if N % 2 == 0 and (N // 2) % 8 == 0:
        tile_n = min(tile_n, N // 2)                # >= 2 grid steps (v7x: 2 TCs)
    assert N % tile_n == 0, "token count must be divisible by tile_n"

    weights = (kp["w1"], kp["b1"], kp["w2"], kp["b_proj"])

    def resident(a):
        # whole array VMEM-resident: constant block index across grid steps
        return pl.BlockSpec(a.shape, lambda i: (0, 0))

    return pl.pallas_call(
        roadrunner_kernel,
        out_shape=jax.ShapeDtypeStruct((N, D), jnp.bfloat16),
        grid=(N // tile_n,),
        in_specs=[pl.BlockSpec((tile_n, D), lambda i: (i, 0))]
                 + [resident(w) for w in weights],
        out_specs=pl.BlockSpec((tile_n, D), lambda i: (i, 0)),
        compiler_params=pltpu.CompilerParams(
            dimension_semantics=("parallel",),
            # ~0.6 MiB of weights + MiB-class activation tiles: 32 MiB keeps
            # comfortable headroom even on v7x's 64 MiB/TC.
            vmem_limit_bytes=32 * 1024 * 1024),
    )(x, *weights)


def make_raw_params(key, D, H, R1, R2):
    """Deterministic synthetic parameters matching the module's shapes."""
    ks = jax.random.split(key, 10)
    f = lambda k, s, scale=0.05: (scale * jax.random.normal(k, s)).astype(jnp.float32)

    w_fc = f(ks[0], (H, D))
    b_fc = f(ks[1], (H,))
    w_proj = f(ks[2], (D, H))
    b_proj = f(ks[3], (D,))

    u_fc = f(ks[4], (H, R1))
    s_fc = jnp.abs(f(ks[5], (R1,), scale=1.0)) + 0.1
    vh_fc = f(ks[6], (D, R1))

    u_proj = f(ks[7], (D, R2))
    s_proj = jnp.abs(f(ks[8], (R2,), scale=1.0)) + 0.1
    vh_proj = f(ks[9], (R2, H))

    return dict(w_fc=w_fc, b_fc=b_fc, w_proj=w_proj, b_proj=b_proj,
                u_fc=u_fc, s_fc=s_fc, vh_fc=vh_fc,
                u_proj=u_proj, s_proj=s_proj, vh_proj=vh_proj)


def prepare_params(raw, alpha):
    """One-time weight prep: fold the SVD factors dense (ranks are tiny vs D,H),
    fold scales and alpha/(1-alpha) into the weights, fuse both stages'
    matmuls into one [D,2H] and one [2H,D] weight, cast MXU operands to bf16."""
    H, D = raw["w_fc"].shape
    bf16 = jnp.bfloat16
    hp = jax.lax.Precision.HIGHEST  # exact f32 folds (one-time cost)

    # Low-rank fc folded dense: x @ (Vh_fc * S_fc) @ U_fc.T  ==  x @ w_lr_fc
    w_lr_fc = jnp.matmul(raw["vh_fc"] * raw["s_fc"][None, :],
                         raw["u_fc"].T, precision=hp)                  # [D, H]
    w1 = jnp.concatenate([raw["w_fc"].T, w_lr_fc], axis=1).astype(bf16)  # [D, 2H]
    b1 = jnp.concatenate([raw["b_fc"], raw["b_fc"]]).reshape(1, 2 * H)    # [1, 2H]

    # Low-rank proj folded dense: hidden @ Vh_proj.T diag(S_proj) U_proj.T
    w_lr_proj = jnp.matmul(raw["vh_proj"].T * raw["s_proj"][None, :],
                           raw["u_proj"].T, precision=hp)               # [H, D]
    w2 = jnp.concatenate([(1.0 - alpha) * raw["w_proj"].T,
                          alpha * w_lr_proj], axis=0).astype(bf16)      # [2H, D]

    return dict(
        w1=w1,
        b1=b1.astype(jnp.float32),
        w2=w2,
        b_proj=raw["b_proj"].reshape(1, D).astype(jnp.float32),
    )


def reference_forward(x, raw, alpha=0.8):
    """Pure-JAX f32 reference with the exact module semantics (erf GELU)."""
    routed = jnp.matmul(x, raw["vh_fc"]) * raw["s_fc"]
    hidden = jax.nn.gelu(jnp.matmul(routed, raw["u_fc"].T) + raw["b_fc"],
                         approximate=False)
    out = jnp.matmul(hidden, raw["vh_proj"].T) * raw["s_proj"]
    out = jnp.matmul(out, raw["u_proj"].T) + raw["b_proj"]
    fb_hidden = jax.nn.gelu(jnp.matmul(x, raw["w_fc"].T) + raw["b_fc"],
                            approximate=False)
    fb_out = jnp.matmul(fb_hidden, raw["w_proj"].T) + raw["b_proj"]
    return alpha * out + (1.0 - alpha) * fb_out


if __name__ == "__main__":
    # Small but TPU-tile-friendly shapes: B=4, T=128 -> N=512 tokens (wrapper
    # caps tile_n to 256 -> 2 grid steps), model dim D=128, hidden H=256,
    # SVD ranks R1=R2=16.
    B, T, D, H, R1, R2 = 4, 128, 128, 256, 16, 16
    alpha = 0.8

    key = jax.random.PRNGKey(0)
    k_x, k_p = jax.random.split(key)
    x = jax.random.normal(k_x, (B, T, D), dtype=jnp.float32)
    raw = make_raw_params(k_p, D, H, R1, R2)
    kp = prepare_params(raw, alpha)

    x2d = x.reshape(B * T, D)
    out = roadrunner_mlp(x2d, kp, tile_n=512)
    out = jax.block_until_ready(out).astype(jnp.float32).reshape(B, T, D)

    ref = reference_forward(x, raw, alpha=alpha)
    err = float(jnp.max(jnp.abs(out - ref)))
    # bf16 MXU operands / bf16 I/O / tanh-GELU vs f32 erf reference
    assert err < 3e-2, f"max abs err {err}"

    print("KERNEL_OK")
</pallas_src>

<mosaic_0001>
module attributes {stable_mosaic.version = 11 : i64} {
  func.func @roadrunner_kernel(%arg0: i32, %arg1: memref<256x128xbf16, #tpu.memory_space<vmem>>, %arg2: memref<128x512xbf16, #tpu.memory_space<vmem>>, %arg3: memref<1x512xf32, #tpu.memory_space<vmem>>, %arg4: memref<512x128xbf16, #tpu.memory_space<vmem>>, %arg5: memref<1x128xf32, #tpu.memory_space<vmem>>, %arg6: memref<256x128xbf16, #tpu.memory_space<vmem>>) attributes {dimension_semantics = [#tpu.dimension_semantics<parallel>], iteration_bounds = array<i64: 2>, scalar_prefetch = 0 : i64, scratch_operands = 0 : i64, tpu.core_type = #tpu.core_type<tc>, window_params = [{transform_indices = @transform_0, window_bounds = array<i64: 256, 128>}, {pipeline_mode = #tpu.pipeline_mode<synchronous>, transform_indices = @transform_1, window_bounds = array<i64: 128, 512>}, {pipeline_mode = #tpu.pipeline_mode<synchronous>, transform_indices = @transform_2, window_bounds = array<i64: 1, 512>}, {pipeline_mode = #tpu.pipeline_mode<synchronous>, transform_indices = @transform_3, window_bounds = array<i64: 512, 128>}, {pipeline_mode = #tpu.pipeline_mode<synchronous>, transform_indices = @transform_4, window_bounds = array<i64: 1, 128>}, {transform_indices = @transform_5, window_bounds = array<i64: 256, 128>}]} {
    %c0 = arith.constant 0 : index
    %c0_0 = arith.constant 0 : index
    %0 = vector.load %arg1[%c0, %c0_0] : memref<256x128xbf16, #tpu.memory_space<vmem>>, vector<256x128xbf16>
    %c0_1 = arith.constant 0 : index
    %c0_2 = arith.constant 0 : index
    %1 = vector.load %arg2[%c0_1, %c0_2] : memref<128x512xbf16, #tpu.memory_space<vmem>>, vector<128x512xbf16>
    %cst = arith.constant dense<0.000000e+00> : vector<256x512xf32>
    %2 = tpu.matmul %0, %1, %cst {dimension_numbers = #tpu.dot_dimension_numbers<[1], [0], [0], [1], [0, 0, 1, 1], [], []>} : vector<256x128xbf16>, vector<128x512xbf16>, vector<256x512xf32> -> vector<256x512xf32>
    %c0_3 = arith.constant 0 : index
    %c0_4 = arith.constant 0 : index
    %3 = vector.load %arg3[%c0_3, %c0_4] : memref<1x512xf32, #tpu.memory_space<vmem>>, vector<1x512xf32>
    %4 = vector.broadcast %3 : vector<1x512xf32> to vector<256x512xf32>
    %5 = arith.addf %2, %4 : vector<256x512xf32>
    %6 = arith.truncf %5 : vector<256x512xf32> to vector<256x512xbf16>
    %7 = arith.mulf %6, %6 : vector<256x512xbf16>
    %8 = arith.mulf %6, %7 : vector<256x512xbf16>
    %cst_5 = arith.constant 4.467770e-02 : bf16
    %9 = vector.broadcast %cst_5 : bf16 to vector<256x512xbf16>
    %10 = arith.mulf %9, %8 : vector<256x512xbf16>
    %11 = arith.addf %6, %10 : vector<256x512xbf16>
    %cst_6 = arith.constant 7.968750e-01 : bf16
    %12 = vector.broadcast %cst_6 : bf16 to vector<256x512xbf16>
    %13 = arith.mulf %12, %11 : vector<256x512xbf16>
    %14 = math.tanh %13 : vector<256x512xbf16>
    %cst_7 = arith.constant 1.000000e+00 : bf16
    %15 = vector.broadcast %cst_7 : bf16 to vector<256x512xbf16>
    %16 = arith.addf %15, %14 : vector<256x512xbf16>
    %cst_8 = arith.constant 5.000000e-01 : bf16
    %17 = vector.broadcast %cst_8 : bf16 to vector<256x512xbf16>
    %18 = arith.mulf %17, %16 : vector<256x512xbf16>
    %19 = arith.mulf %6, %18 : vector<256x512xbf16>
    %c0_9 = arith.constant 0 : index
    %c0_10 = arith.constant 0 : index
    %20 = vector.load %arg4[%c0_9, %c0_10] : memref<512x128xbf16, #tpu.memory_space<vmem>>, vector<512x128xbf16>
    %cst_11 = arith.constant dense<0.000000e+00> : vector<256x128xf32>
    %21 = tpu.matmul %19, %20, %cst_11 {dimension_numbers = #tpu.dot_dimension_numbers<[1], [0], [0], [1], [0, 0, 1, 1], [], []>} : vector<256x512xbf16>, vector<512x128xbf16>, vector<256x128xf32> -> vector<256x128xf32>
    %c0_12 = arith.constant 0 : index
    %c0_13 = arith.constant 0 : index
    %22 = vector.load %arg5[%c0_12, %c0_13] : memref<1x128xf32, #tpu.memory_space<vmem>>, vector<1x128xf32>
    %23 = vector.broadcast %22 : vector<1x128xf32> to vector<256x128xf32>
    %24 = arith.addf %21, %23 : vector<256x128xf32>
    %25 = arith.truncf %24 : vector<256x128xf32> to vector<256x128xbf16>
    %c0_14 = arith.constant 0 : index
    %c0_15 = arith.constant 0 : index
    %26 = vector.load %arg6[%c0_14, %c0_15] : memref<256x128xbf16, #tpu.memory_space<vmem>>, vector<256x128xbf16>
    tpu.vector_store %arg6[%c0_14, %c0_15], %25 {strides = array<i32>} : memref<256x128xbf16, #tpu.memory_space<vmem>>, vector<256x128xbf16>,
    return
  }
  func.func @transform_0(%arg0: i32) -> (i32, i32) {
    %c0_i32 = arith.constant 0 : i32
    %c0_i32_0 = arith.constant 0 : i32
    return %arg0, %c0_i32 : i32, i32
  }
  func.func @transform_1(%arg0: i32) -> (i32, i32) {
    %c0_i32 = arith.constant 0 : i32
    %c0_i32_0 = arith.constant 0 : i32
    %c0_i32_1 = arith.constant 0 : i32
    return %c0_i32, %c0_i32_0 : i32, i32
  }
  func.func @transform_2(%arg0: i32) -> (i32, i32) {
    %c0_i32 = arith.constant 0 : i32
    %c0_i32_0 = arith.constant 0 : i32
    %c0_i32_1 = arith.constant 0 : i32
    return %c0_i32, %c0_i32_0 : i32, i32
  }
  func.func @transform_3(%arg0: i32) -> (i32, i32) {
    %c0_i32 = arith.constant 0 : i32
    %c0_i32_0 = arith.constant 0 : i32
    %c0_i32_1 = arith.constant 0 : i32
    return %c0_i32, %c0_i32_0 : i32, i32
  }
  func.func @transform_4(%arg0: i32) -> (i32, i32) {
    %c0_i32 = arith.constant 0 : i32
    %c0_i32_0 = arith.constant 0 : i32
    %c0_i32_1 = arith.constant 0 : i32
    return %c0_i32, %c0_i32_0 : i32, i32
  }
  func.func @transform_5(%arg0: i32) -> (i32, i32) {
    %c0_i32 = arith.constant 0 : i32
    %c0_i32_0 = arith.constant 0 : i32
    return %arg0, %c0_i32 : i32, i32
  }
}

</mosaic_0001>

<bundles_post_ra>
// kernel: tpu_custom_call.1
= control target key start
LH: loop header
LB: loop body
LE: loop exit
PB: predicated region body
PF: predicated region fallthrough
CT: control target
= control target key end

     0   :  { %10 = vsyncpa [#allocation3], 0  ;;  %s4840_s0 = inlined_call_operand.hbm [shape: bf16[512,128], index: 0, kind: input, shape index: {}]   ;;  %s4841_s1 = inlined_call_operand.hbm [shape: bf16[128,512], index: 1, kind: input, shape index: {}]   ;;  %s4842_s2 = inlined_call_operand.vmem [shape: f32[1,512], index: 2, kind: input, shape index: {}]   ;;  %s4843_s3 = inlined_call_operand.hbm [shape: bf16[512,128], index: 3, kind: input, shape index: {}]   ;;  %s4844_s4 = inlined_call_operand.vmem [shape: f32[1,128], index: 4, kind: input, shape index: {}]   ;;  %s4845_s5 = inlined_call_operand.hbm [shape: bf16[512,128], index: 5, kind: output, shape index: {}]  }
   0x1   :  { %12 = vsyncpa [#allocation3 + $0x1], 0 }
   0x2   :  { %13 = vsyncpa [#allocation6], 0 }
   0x3   :  { %14 = vsyncpa [#allocation4], 0 }
   0x4   :  { %16 = vsyncpa [#allocation4 + $0x1], 0  ;;  %s3479_s18 = smov 0   ;;  %s3481_s19 = smov 0  }
   0x5   :  { %s3483_s20 = smov 0   ;;  %s3485_s21 = smov 0  }
   0x6 LB: > { %s3500_s22 = sadd.s32 4294967295, %s3436_s21   ;;  %s2498_s23 = sadd.s32 4294967294, %s3436_s21   ;;  %s3436_s21 = sphi %s3485_s21, %s5011_s21   ;;  %s3432_s20 = sphi %s3483_s20, %s5010_s20   ;;  %s3428_s19 = sphi %s3481_s19, %s5009_s19   ;;  %s3424_s18 = sphi %s3479_s18, %s5008_s18  }
   0x7   : > { %p42_p0 = scmp.ne.s32.totalorder %s3428_s19, %s3424_s18  ;;  %p4846_p1 = scmp.eq.s32.totalorder %s3500_s22, 0 }
   0x8   : > { %p156_p3 = scmp.eq.s32.totalorder %s2498_s23, 1  ;;  %p2499_p5 = scmp.ge.s32.totalorder %s3436_s21, 1 }
   0x9   : > { %p3509_p4 = por %p4846_p1, %p42_p0  ;;  %p163_p7 = scmp.lt.s32.totalorder %s3436_s21, 3 }
   0xa   : > { %p3514_p6 = por %p156_p3, %p42_p0  ;;  %s3438_s27 = smov [#allocation5]  }
   0xb   : > { %s4893_s24 = scalar_select %p3509_p4, 1, 0 }
   0xc   : > { %s4894_s25 = scalar_select %p3514_p6, 1, 0 }
   0xd   : > { %p3519_p8 = pnand %p2499_p5, %p163_p7  ;;  %s175_s28 = sshll.u32 %s3438_s27, 4  ;;  %s3523_s28 = int_to_ptr.vmem [resolvable:$true] %s175_s28 }
   0xe   : > { %s3439_s30 = smov [#allocation7]   ;;  %s3280_s9 = scalar_lea.hbm %s4841_s1, 4096 }
   0xf   : > { %p2994_p9 = pneg %p3519_p8  ;;  %s191_s6 = sshll.u32 %s3439_s30, 4  ;;  %s3534_s6 = int_to_ptr.vmem [resolvable:$true] %s191_s6 }
  0x10   : > { %p3281_p12 = scmp.ne.s32.totalorder %s4841_s1, %s3280_s9  ;;  %p3287_p5 = scmp.lt.u32.totalorder %s3280_s9, %s4841_s1 }
  0x11   : > { %p3530_p11 = pnand %p2994_p9, %p4846_p1 }
  0x13   : > { %p3282_p13 = pneg %p3530_p11 }
  0x15   : > { %p3283_p0 = pnand %p3282_p13, %p3281_p12 }
  0x17   : > { %p3284_p3 = pneg %p3283_p0 }
  0x19   : > { %p3289_p7 = pnand %p3287_p5, %p3284_p3 }
  0x1b   : > { %3292 = shalt.err (!%p3289_p7)
}
  0x1c   : > { %s3293_s14 = scalar_lea.vmem %s3523_s28, 4096  ;;  %p3301_p2 = scmp.lt.s32.totalorder %s3523_s28, %s3523_s28 }
  0x1d   : > { %p3294_p9 = scmp.ne.s32.totalorder %s3523_s28, %s3293_s14  ;;  %p3302_p12 = scmp.lt.s32.totalorder %s3293_s14, %s3293_s14 }
  0x1f   : > { %p3296_p10 = pnand %p3294_p9, %p3282_p13  ;;  %p3303_p0 = por %p3302_p12, %p3301_p2 }
  0x21   : > { %p3297_p1 = pneg %p3296_p10 }
  0x23   : > { %p3304_p6 = pnand %p3303_p0, %p3297_p1 }
  0x25   : > { %3307 = shalt.err (!%p3304_p6)
}
  0x26   : > { %s3440_s15 = smov 256   ;;  %s3441_s16 = smov 16  }
  0x27   : > { %2997 = dma.hbm_to_vmem [thread:$0]  (!%p3530_p11), %s4841_s1, 4096, %s3523_s28, [#allocation6], %s3440_s15, %s3440_s15, %s3441_s16  }
  0x28   : > { %s3308_s7 = scalar_lea.hbm %s4843_s3, 4096 }
  0x29   : > { %p3309_p2 = scmp.ne.s32.totalorder %s4843_s3, %s3308_s7  ;;  %p3315_p10 = scmp.lt.u32.totalorder %s3308_s7, %s4843_s3 }
  0x2b   : > { %p3311_p1 = pnand %p3309_p2, %p3282_p13 }
  0x2d   : > { %p3312_p6 = pneg %p3311_p1 }
  0x2f   : > { %p3317_p3 = pnand %p3315_p10, %p3312_p6 }
  0x31   : > { %3320 = shalt.err (!%p3317_p3)
}
  0x32   : > { %s3321_s28 = scalar_lea.vmem %s3534_s6, 4096  ;;  %p3329_p12 = scmp.lt.s32.totalorder %s3534_s6, %s3534_s6 }
  0x33   : > { %p3322_p5 = scmp.ne.s32.totalorder %s3534_s6, %s3321_s28  ;;  %p3330_p0 = scmp.lt.s32.totalorder %s3321_s28, %s3321_s28 }
  0x35   : > { %p3324_p7 = pnand %p3322_p5, %p3282_p13  ;;  %p3331_p2 = por %p3330_p0, %p3329_p12 }
  0x37   : > { %p3325_p9 = pneg %p3324_p7 }
  0x39   : > { %p3332_p1 = pnand %p3331_p2, %p3325_p9 }
  0x3b   : > { %3335 = shalt.err (!%p3332_p1)
}
  0x3c   : > { %s3442_s12 = smov 64   ;;  %s3443_s13 = smov 4  }
  0x3d   : > { %3000 = dma.hbm_to_vmem [thread:$0]  (!%p3530_p11), %s4843_s3, 4096, %s3534_s6, [#allocation6], %s3442_s12, %s3442_s12, %s3443_s13  }
  0x3e   : > { %s3592_s16 = sadd.s32 1, %s3436_s21   ;;  %s29_s23 = sadd.s32 1, %s3432_s20 }
  0x3f   : > { %s26_s17 = ssub.s32 %s3436_s21, %s3592_s16  ;;  %p36_p6 = scmp.ne.s32.totalorder %s3432_s20, %s3428_s19 }
  0x40   : > { %p27_p13 = scmp.eq.s32.totalorder %s26_s17, 0  ;;  %p37_p10 = scmp.eq.s32.totalorder %s3436_s21, 0 }
  0x41   : > { %p4897_p5 = scmp.eq.s32.totalorder %s3500_s22, 1  ;;  %p3011_p9 = scmp.lt.s32.totalorder %s3436_s21, 2 }
  0x42   : > { %s3601_s27 = scalar_select %p27_p13, %s3432_s20, %s29_s23  }
  0x43   : > { %p38_p3 = por %p37_p10, %p36_p6  ;;  %p3605_p7 = por %p4897_p5, %p36_p6 }
  0x44   : > { %s208_s30 = sand.u32 1, %s3432_s20   ;;  %s2629_s6 = sshll.u32 %s3436_s21, 11 }
  0x45   : > { %s4898_s29 = scalar_select %p3605_p7, 1, 0 }
  0x46   : > { %s2503_s7 = sshll.u32 %s208_s30, 7  ;;  %s3615_s10 = scalar_lea.hbm %s4840_s0, %s2629_s6 }
  0x47   : > { %s212_s11 = scalar_lea.vmem [#allocation2], %s2503_s7  ;;  %p3619_p11 = pnand %p3011_p9, %p38_p3 }
  0x48   : > { %s219_s28 = sshll.u32 %s212_s11, 4  ;;  %s3623_s15 = scalar_lea.sflag [#allocation3], %s208_s30  ;;  %s3617_s28 = int_to_ptr.vmem [resolvable:$true] %s219_s28 }
  0x49   : > { %s3336_s17 = scalar_lea.hbm %s3615_s10, 2048  ;;  %p3338_p0 = pneg %p3619_p11 }
  0x4a   : > { %p3337_p12 = scmp.ne.s32.totalorder %s3615_s10, %s3336_s17  ;;  %s3341_s6 = scalar_lea.hbm %s4840_s0, 4096 }
  0x4b   : > { %p3342_p13 = scmp.lt.u32.totalorder %s3615_s10, %s4840_s0  ;;  %p3343_p6 = scmp.lt.u32.totalorder %s3341_s6, %s3336_s17 }
  0x4c   : > { %p3339_p2 = pnand %p3338_p0, %p3337_p12  ;;  %p3345_p3 = scmp.lt.u32.totalorder %s3336_s17, %s3615_s10 }
  0x4d   : > { %p3344_p10 = por %p3343_p6, %p3342_p13 }
  0x4e   : > { %p3340_p1 = pneg %p3339_p2 }
  0x4f   : > { %p3346_p5 = por %p3345_p3, %p3344_p10 }
  0x51   : > { %p3347_p9 = pnand %p3346_p5, %p3340_p1 }
  0x53   : > { %3350 = shalt.err (!%p3347_p9)
}
  0x54   : > { %s3351_s30 = scalar_lea.vmem %s3617_s28, 2048  ;;  %s3444_s11 = smov [#allocation2]  }
  0x55   : > { %p3352_p12 = scmp.ne.s32.totalorder %s3617_s28, %s3351_s30  ;;  %s3356_s23 = sshll.u32 %s3444_s11, 4  ;;  %s3357_s23 = int_to_ptr.vmem [resolvable:$false] %s3356_s23 }
  0x56   : > { %s3358_s7 = scalar_lea.vmem %s3357_s23, 4096  ;;  %p3359_p4 = scmp.lt.s32.totalorder %s3617_s28, %s3357_s23 }
  0x57   : > { %p3354_p2 = pnand %p3352_p12, %p3338_p0  ;;  %p3360_p13 = scmp.lt.s32.totalorder %s3358_s7, %s3351_s30 }
  0x59   : > { %p3355_p7 = pneg %p3354_p2  ;;  %p3361_p6 = por %p3360_p13, %p3359_p4 }
  0x5b   : > { %p3362_p10 = pnand %p3361_p6, %p3355_p7 }
  0x5d   : > { %3365 = shalt.err (!%p3362_p10)
}
  0x5e   : > { %3004 = dma.hbm_to_vmem [thread:$0]  (!%p3619_p11), %s3615_s10, 2048, %s3617_s28, %s3623_s15, %s3442_s12, %s3442_s12, %s3443_s13  }
  0x5f   : > { %231 = sbr.rel (%p3519_p8) target bundleno = 814 (0x32e), region = 40 }
  0x66   : > { %s3657_s17 = sand.u32 1, %s3428_s19   ;;  %p4900_p4 = scmp.ne.s32.totalorder %s4893_s24, 0 }
  0x67   : > { %s2507_s6 = sshll.u32 %s3657_s17, 7  ;;  %s234_s8 = scalar_lea.sflag [#allocation3], %s3657_s17 }
  0x68   : > { %s3663_s14 = scalar_lea.vmem [#allocation2], %s2507_s6 }
  0x69   : > { %3411 = dma.done.wait (%p4900_p4), %s234_s8, 2048  }
  0x6a   : > { %3413 = vsyncadd (%p4900_p4), %s234_s8, 4294965248  ;;  %p4901_p7 = scmp.eq.s32.totalorder %s3500_s22, 0 }
  0x6c   : > { %3415 = dma.done.wait (%p4901_p7), [#allocation6], 8192   ;;  %p4902_p8 = pmov %p4901_p7 }
  0x6d   : > { %v3445_v0 = vmov 0   ;;  %v3056_v1 = vld [vmem:[#allocation5 + $0x4] ss:$16 sps:$4 sm:$0xff]   ;;  %v3058_v2 = vld [vmem:[#allocation5 + $0xc] ss:$16 sps:$4 sm:$0xff]   ;;  %s4741_s10 = scalar_lea.vmem [#allocation8], %s2507_s6 }
  0x6e   : > { %3417 = vsyncadd (%p4902_p8), [#allocation6], 4294959104  ;;  %653 = vmatprep.mubr.bf16.mxu0 %v3445_v0  ;;  %846 = vmatprep.mubr.bf16.mxu1 %v3445_v0  ;;  %v3060_v3 = vld [vmem:[#allocation5] ss:$16 sps:$4 sm:$0xff]   ;;  %v3061_v4 = vld [vmem:[#allocation5 + $0x8] ss:$16 sps:$4 sm:$0xff]  }
  0x6f   : > { %621 = vmatprep.subr.bf16.mxu0 %v3056_v1  ;;  %814 = vmatprep.subr.bf16.mxu1 %v3058_v2  ;;  %v3062_v5 = vld [vmem:[#allocation5 + $0x24] ss:$16 sps:$4 sm:$0xff]   ;;  %v3064_v6 = vld [vmem:[#allocation5 + $0x2c] ss:$16 sps:$4 sm:$0xff]   ;;  %v3066_v7 = vld [vmem:[#allocation5 + $0x20] ss:$16 sps:$4 sm:$0xff]  }
  0x70   : > { %622 = vmatpush1.bf16.msra.mxu0 %v3060_v3  ;;  %815 = vmatpush1.bf16.msra.mxu1 %v3061_v4  ;;  %v3067_v8 = vld [vmem:[#allocation5 + $0x28] ss:$16 sps:$4 sm:$0xff]   ;;  %v3068_v9 = vld [vmem:[#allocation5 + $0x44] ss:$16 sps:$4 sm:$0xff]   ;;  %v3070_v10 = vld [vmem:[#allocation5 + $0x4c] ss:$16 sps:$4 sm:$0xff]  }
  0x71   : > { %623 = vmatprep.subr.bf16.mxu0 %v3062_v5  ;;  %816 = vmatprep.subr.bf16.mxu1 %v3064_v6  ;;  %v3072_v11 = vld [vmem:[#allocation5 + $0x40] ss:$16 sps:$4 sm:$0xff]   ;;  %v3073_v12 = vld [vmem:[#allocation5 + $0x48] ss:$16 sps:$4 sm:$0xff]   ;;  %v3074_v13 = vld [vmem:[#allocation5 + $0x64] ss:$16 sps:$4 sm:$0xff]  }
  0x72   : > { %v3076_v14 = vld [vmem:[#allocation5 + $0x6c] ss:$16 sps:$4 sm:$0xff]   ;;  %v3078_v15 = vld [vmem:[#allocation5 + $0x60] ss:$16 sps:$4 sm:$0xff]   ;;  %v3079_v16 = vld [vmem:[#allocation5 + $0x68] ss:$16 sps:$4 sm:$0xff]  }
  0x73   : > { %v3080_v17 = vld [vmem:[#allocation5 + $0x84] ss:$16 sps:$4 sm:$0xff]   ;;  %v3082_v18 = vld [vmem:[#allocation5 + $0x8c] ss:$16 sps:$4 sm:$0xff]   ;;  %v3084_v19 = vld [vmem:[#allocation5 + $0x80] ss:$16 sps:$4 sm:$0xff]  }
  0x74   : > { %624 = vmatpush1.bf16.msra.mxu0 %v3066_v7  ;;  %817 = vmatpush1.bf16.msra.mxu1 %v3067_v8  ;;  %v3085_v20 = vld [vmem:[#allocation5 + $0x88] ss:$16 sps:$4 sm:$0xff]   ;;  %v3086_v21 = vld [vmem:[#allocation5 + $0xa4] ss:$16 sps:$4 sm:$0xff]   ;;  %v3088_v22 = vld [vmem:[#allocation5 + $0xac] ss:$16 sps:$4 sm:$0xff]  }
  0x75   : > { %625 = vmatprep.subr.bf16.mxu0 %v3068_v9  ;;  %818 = vmatprep.subr.bf16.mxu1 %v3070_v10  ;;  %v3090_v23 = vld [vmem:[#allocation5 + $0xa0] ss:$16 sps:$4 sm:$0xff]   ;;  %v3091_v24 = vld [vmem:[#allocation5 + $0xa8] ss:$16 sps:$4 sm:$0xff]   ;;  %v3092_v25 = vld [vmem:[#allocation5 + $0xc4] ss:$16 sps:$4 sm:$0xff]  }
  0x76   : > { %v3094_v26 = vld [vmem:[#allocation5 + $0xcc] ss:$16 sps:$4 sm:$0xff]   ;;  %v3096_v27 = vld [vmem:[#allocation5 + $0xc0] ss:$16 sps:$4 sm:$0xff]   ;;  %v3097_v28 = vld [vmem:[#allocation5 + $0xc8] ss:$16 sps:$4 sm:$0xff]  }
  0x77   : > { %v3098_v29 = vld [vmem:[#allocation5 + $0xe4] ss:$16 sps:$4 sm:$0xff]   ;;  %v3100_v30 = vld [vmem:[#allocation5 + $0xec] ss:$16 sps:$4 sm:$0xff]   ;;  %v3102_v31 = vld [vmem:[#allocation5 + $0xe0] ss:$16 sps:$4 sm:$0xff]  }
  0x78   : > { %626 = vmatpush1.bf16.msra.mxu0 %v3072_v11  ;;  %819 = vmatpush1.bf16.msra.mxu1 %v3073_v12  ;;  %v3103_v32 = vld [vmem:[#allocation5 + $0xe8] ss:$16 sps:$4 sm:$0xff]   ;;  %v3104_v33 = vld [vmem:[%s3663_s14] sm:$0xff]   ;;  %v3106_v42 = vld [vmem:[%s3663_s14 + $0x10] sm:$0xff]   ;;  %s2662_s28 = sshll.u32 %s3500_s22, 11  ;;  %s2406_s15 = sshll.u32 %s4741_s10, 4  ;;  %s4795_s15 = int_to_ptr.vmem [resolvable:$true] %s2406_s15 }
  0x79   : > { %627 = vmatprep.subr.bf16.mxu0 %v3074_v13  ;;  %820 = vmatprep.subr.bf16.mxu1 %v3076_v14  ;;  %v3119_v34 = vld [vmem:[#allocation7 + $0x40] sm:$0xff]   ;;  %v3105_v35 = vld [vmem:[%s3663_s14 + $0x8] sm:$0xff]   ;;  %v3128_v44 = vld [vmem:[#allocation7 + $0x50] sm:$0xff]   ;;  %s4793_s11 = scalar_lea.hbm %s4845_s5, %s2662_s28  ;;  %s2393_s23 = scalar_lea.sflag [#allocation4], %s3657_s17 }
  0x7a   : > { %v3121_v36 = vld [vmem:[#allocation7] sm:$0xff]   ;;  %v3124_v39 = vld [vmem:[#allocation7 + $0x48] sm:$0xff]   ;;  %v3129_v45 = vld [vmem:[#allocation7 + $0x10] sm:$0xff]   ;;  %s3366_s7 = scalar_lea.vmem %s4795_s15, 2048  ;;  %p5005_p0 = scmp.ne.s32.totalorder %s4898_s29, 0 }
  0x7b   : > { %v3122_v37 = vld [vmem:[#allocation7 + $0xc0] sm:$0xff]   ;;  %v3125_v40 = vld [vmem:[#allocation7 + $0x8] sm:$0xff]   ;;  %v3130_v46 = vld [vmem:[#allocation7 + $0xd0] sm:$0xff]   ;;  %p3367_p11 = scmp.ne.s32.totalorder %s4795_s15, %s3366_s7  ;;  %s3446_s22 = smov [#allocation8]  }
  0x7c   : > { %628 = vmatpush1.bf16.msra.mxu0 %v3078_v15  ;;  %821 = vmatpush1.bf16.msra.mxu1 %v3079_v16  ;;  %v3123_v38 = vld [vmem:[#allocation7 + $0x80] sm:$0xff]   ;;  %v3126_v41 = vld [vmem:[#allocation7 + $0xc8] sm:$0xff]   ;;  %v3131_v47 = vld [vmem:[#allocation7 + $0x90] sm:$0xff]   ;;  %s3370_s6 = sshll.u32 %s3446_s22, 4  ;;  %s3371_s6 = int_to_ptr.vmem [resolvable:$false] %s3370_s6 }
  0x7d   : > { %629 = vmatprep.subr.bf16.mxu0 %v3080_v17  ;;  %822 = vmatprep.subr.bf16.mxu1 %v3082_v18  ;;  %v3127_v43 = vld [vmem:[#allocation7 + $0x88] sm:$0xff]   ;;  %v3132_v48 = vld [vmem:[#allocation7 + $0x58] sm:$0xff]   ;;  %v3136_v53 = vld [vmem:[#allocation7 + $0x60] sm:$0xff]   ;;  %v345_v18 = vlaneseq  ;;  %p3368_p1 = pnand %p3367_p11, %p5005_p0  ;;  %s3372_s8 = scalar_lea.vmem %s3371_s6, 4096 }
  0x7e   : > { %v3133_v49 = vld [vmem:[#allocation7 + $0x18] sm:$0xff]   ;;  %v3137_v54 = vld [vmem:[#allocation7 + $0x20] sm:$0xff]   ;;  %v3140_v57 = vld [vmem:[#allocation7 + $0x68] sm:$0xff]   ;;  %p3373_p5 = scmp.lt.s32.totalorder %s4795_s15, %s3371_s6  ;;  %p3374_p9 = scmp.lt.s32.totalorder %s3372_s8, %s3366_s7 }
  0x7f   : > { %v3134_v50 = vld [vmem:[#allocation7 + $0xd8] sm:$0xff]   ;;  %v3138_v55 = vld [vmem:[#allocation7 + $0xe0] sm:$0xff]   ;;  %v3141_v58 = vld [vmem:[#allocation7 + $0x28] sm:$0xff]   ;;  %p3369_p3 = pneg %p3368_p1 }
  0x80   : > { %630 = vmatpush1.bf16.msra.mxu0 %v3084_v19  ;;  %823 = vmatpush1.bf16.msra.mxu1 %v3085_v20  ;;  %v3107_v51 = vld [vmem:[%s3663_s14 + $0x18] sm:$0xff]   ;;  %v3139_v56 = vld [vmem:[#allocation7 + $0xa0] sm:$0xff]   ;;  %v3142_v59 = vld [vmem:[#allocation7 + $0xe8] sm:$0xff]   ;;  %v346_v19 = vshrl.u32 %v345_v18, 7  ;;  %p3375_p12 = por %p3374_p9, %p3373_p5 }
  0x81   : > { %631 = vmatprep.subr.bf16.mxu0 %v3086_v21  ;;  %824 = vmatprep.subr.bf16.mxu1 %v3088_v22  ;;  %v3135_v52 = vld [vmem:[#allocation7 + $0x98] sm:$0xff]   ;;  %v3108_v60 = vld [vmem:[%s3663_s14 + $0x20] sm:$0xff]   ;;  %v3143_v61 = vld [vmem:[#allocation7 + $0xa8] sm:$0xff]  }
  0x82   : > { %v3109_v62 = vld [vmem:[%s3663_s14 + $0x28] sm:$0xff]   ;;  %v3110_v63 = vld [vmem:[%s3663_s14 + $0x30] sm:$0xff]   ;;  %v3111_v1 = vld [vmem:[%s3663_s14 + $0x38] sm:$0xff]   ;;  %v355_v20 = vsub.s32 2, %v346_v19  ;;  %v359_v21 = vsub.s32 3, %v346_v19  ;;  %p3376_p2 = pnand %p3375_p12, %p3369_p3 }
  0x83   : > { %v3112_v2 = vld [vmem:[%s3663_s14 + $0x40] sm:$0xff]   ;;  %v3113_v3 = vld [vmem:[%s3663_s14 + $0x48] sm:$0xff]   ;;  %v3114_v4 = vld [vmem:[%s3663_s14 + $0x50] sm:$0xff]  }
  0x84   : > { %632 = vmatpush1.bf16.msra.mxu0 %v3090_v23  ;;  %825 = vmatpush1.bf16.msra.mxu1 %v3091_v24  ;;  %v3115_v5 = vld [vmem:[%s3663_s14 + $0x58] sm:$0xff]   ;;  %v3116_v6 = vld [vmem:[%s3663_s14 + $0x60] sm:$0xff]   ;;  %v3117_v7 = vld [vmem:[%s3663_s14 + $0x68] sm:$0xff]   ;;  %v351_v23 = vsub.s32 1, %v346_v19 }
  0x85   : > { %633 = vmatprep.subr.bf16.mxu0 %v3092_v25  ;;  %826 = vmatprep.subr.bf16.mxu1 %v3094_v26  ;;  %v3118_v8 = vld [vmem:[%s3663_s14 + $0x70] sm:$0xff]   ;;  %v3148_v13 = vld [vmem:[#allocation7 + $0x78] sm:$0xff]   ;;  %v343_v22 = vld [vmem:[%s4842_s2] sm:$0xf] }
  0x86   : > { %v3144_v9 = vld [vmem:[#allocation7 + $0x70] sm:$0xff]   ;;  %v3150_v14 = vld [vmem:[#allocation7 + $0xf8] sm:$0xff]   ;;  %v3724_v24 = vrot.slane %v343_v22, %v355_v20  ;;  %v3726_v25 = vrot.slane %v343_v22, %v359_v21 }
  0x87   : > { %v3146_v10 = vld [vmem:[#allocation7 + $0xf0] sm:$0xff]   ;;  %v3120_v15 = vld [vmem:[%s3663_s14 + $0x78] sm:$0xff]  }
  0x88   : > { %634 = vmatpush1.bf16.msra.mxu0 %v3096_v27  ;;  %827 = vmatpush1.bf16.msra.mxu1 %v3097_v28  ;;  %v3145_v11 = vld [vmem:[#allocation7 + $0x30] sm:$0xff]   ;;  %v3149_v16 = vld [vmem:[#allocation7 + $0x38] sm:$0xff]  }
  0x89   : > { %635 = vmatprep.subr.bf16.mxu0 %v3098_v29  ;;  %828 = vmatprep.subr.bf16.mxu1 %v3100_v30  ;;  %v3147_v12 = vld [vmem:[#allocation7 + $0xb0] sm:$0xff]   ;;  %v3151_v17 = vld [vmem:[#allocation7 + $0xb8] sm:$0xff]   ;;  %v3730_v29 = vrot.slane %v343_v22, %v351_v23 }
  0x8c   : > { %636 = vmatpush1.bf16.msra.mxu0 %v3102_v31  ;;  %829 = vmatpush1.bf16.msra.mxu1 %v3103_v32 }
  0x8d   : > { %2758 = vmatprep.subr.bf16.mxu0 %v3119_v34  ;;  %2870 = vmatprep.subr.bf16.mxu1 %v3122_v37 }
  0x8f   : > { %654 = vmatmul.mubr.bf16.vlgmr.msra.gmra.mrb[0].mxu0 %v3104_v33  ;;  %847 = vmatmul.mubr.bf16.vlgmr.msra.gmra.mrb[0].mxu1 %v3104_v33 }
  0x90   : > { %663 = vmatprep.mubr.bf16.mxu0 %v3445_v0  ;;  %856 = vmatprep.mubr.bf16.mxu1 %v3445_v0 }
  0x91   : > { %2759 = vmatpush3.bf16.msra.mxu0 %v3121_v36  ;;  %2871 = vmatpush3.bf16.msra.mxu1 %v3123_v38 }
  0x92   : > { %2760 = vmatprep.subr.bf16.mxu0 %v3124_v39  ;;  %2872 = vmatprep.subr.bf16.mxu1 %v3126_v41 }
  0x95   : > { %2761 = vmatpush3.bf16.msra.mxu0 %v3125_v40  ;;  %2873 = vmatpush3.bf16.msra.mxu1 %v3127_v43 }
  0x96   : > { %2762 = vmatprep.subr.bf16.mxu0 %v3128_v44  ;;  %2874 = vmatprep.subr.bf16.mxu1 %v3130_v46 }
  0x97   : > { %664 = vmatmul.mubr.bf16.gmra.mrb[4].mxu0 %v3105_v35  ;;  %857 = vmatmul.mubr.bf16.gmra.mrb[4].mxu1 %v3105_v35 }
  0x98   : > { %673 = vmatprep.mubr.bf16.mxu0 %v3445_v0  ;;  %866 = vmatprep.mubr.bf16.mxu1 %v3445_v0 }
  0x99   : > { %2763 = vmatpush3.bf16.msra.mxu0 %v3129_v45  ;;  %2875 = vmatpush3.bf16.msra.mxu1 %v3131_v47 }
  0x9a   : > { %2764 = vmatprep.subr.bf16.mxu0 %v3132_v48  ;;  %2876 = vmatprep.subr.bf16.mxu1 %v3134_v50 }
  0x9d   : > { %2765 = vmatpush3.bf16.msra.mxu0 %v3133_v49  ;;  %2877 = vmatpush3.bf16.msra.mxu1 %v3135_v52 }
  0x9e   : > { %2766 = vmatprep.subr.bf16.mxu0 %v3136_v53  ;;  %2878 = vmatprep.subr.bf16.mxu1 %v3138_v55 }
  0x9f   : > { %674 = vmatmul.mubr.bf16.gmra.mrb[8].mxu0 %v3106_v42  ;;  %867 = vmatmul.mubr.bf16.gmra.mrb[8].mxu1 %v3106_v42 }
  0xa0   : > { %683 = vmatprep.mubr.bf16.mxu0 %v3445_v0  ;;  %876 = vmatprep.mubr.bf16.mxu1 %v3445_v0 }
  0xa1   : > { %2767 = vmatpush3.bf16.msra.mxu0 %v3137_v54  ;;  %2879 = vmatpush3.bf16.msra.mxu1 %v3139_v56 }
  0xa2   : > { %2768 = vmatprep.subr.bf16.mxu0 %v3140_v57  ;;  %2880 = vmatprep.subr.bf16.mxu1 %v3142_v59 }
  0xa5   : > { %2769 = vmatpush3.bf16.msra.mxu0 %v3141_v58  ;;  %2881 = vmatpush3.bf16.msra.mxu1 %v3143_v61 }
  0xa6   : > { %2770 = vmatprep.subr.bf16.mxu0 %v3144_v9  ;;  %2882 = vmatprep.subr.bf16.mxu1 %v3146_v10 }
  0xa7   : > { %684 = vmatmul.mubr.bf16.gmra.mrb[12].mxu0 %v3107_v51  ;;  %877 = vmatmul.mubr.bf16.gmra.mrb[12].mxu1 %v3107_v51 }
  0xa8   : > { %693 = vmatprep.mubr.bf16.mxu0 %v3445_v0  ;;  %886 = vmatprep.mubr.bf16.mxu1 %v3445_v0 }
  0xa9   : > { %2771 = vmatpush3.bf16.msra.mxu0 %v3145_v11  ;;  %2883 = vmatpush3.bf16.msra.mxu1 %v3147_v12 }
  0xaa   : > { %2772 = vmatprep.subr.bf16.mxu0 %v3148_v13  ;;  %2884 = vmatprep.subr.bf16.mxu1 %v3150_v14 }
  0xad   : > { %2773 = vmatpush3.bf16.msra.mxu0 %v3149_v16  ;;  %2885 = vmatpush3.bf16.msra.mxu1 %v3151_v17 }
  0xaf   : > { %694 = vmatmul.mubr.bf16.gmra.mrb[16].mxu0 %v3108_v60  ;;  %887 = vmatmul.mubr.bf16.gmra.mrb[16].mxu1 %v3108_v60 }
  0xb0   : > { %703 = vmatprep.mubr.bf16.mxu0 %v3445_v0  ;;  %896 = vmatprep.mubr.bf16.mxu1 %v3445_v0 }
  0xb7   : > { %704 = vmatmul.mubr.bf16.gmra.mrb[20].mxu0 %v3109_v62  ;;  %897 = vmatmul.mubr.bf16.gmra.mrb[20].mxu1 %v3109_v62 }
  0xb8   : > { %713 = vmatprep.mubr.bf16.mxu0 %v3445_v0  ;;  %906 = vmatprep.mubr.bf16.mxu1 %v3445_v0 }
  0xbf   : > { %714 = vmatmul.mubr.bf16.gmra.mrb[24].mxu0 %v3110_v63  ;;  %907 = vmatmul.mubr.bf16.gmra.mrb[24].mxu1 %v3110_v63 }
  0xc0   : > { %723 = vmatprep.mubr.bf16.mxu0 %v3445_v0  ;;  %916 = vmatprep.mubr.bf16.mxu1 %v3445_v0 }
  0xc7   : > { %724 = vmatmul.mubr.bf16.gmra.mrb[28].mxu0 %v3111_v1  ;;  %917 = vmatmul.mubr.bf16.gmra.mrb[28].mxu1 %v3111_v1 }
  0xc8   : > { %733 = vmatprep.mubr.bf16.mxu0 %v3445_v0  ;;  %926 = vmatprep.mubr.bf16.mxu1 %v3445_v0 }
  0xcf   : > { %734 = vmatmul.mubr.bf16.gmra.mrb[32].mxu0 %v3112_v2  ;;  %927 = vmatmul.mubr.bf16.gmra.mrb[32].mxu1 %v3112_v2 }
  0xd0   : > { %743 = vmatprep.mubr.bf16.mxu0 %v3445_v0  ;;  %936 = vmatprep.mubr.bf16.mxu1 %v3445_v0 }
  0xd7   : > { %744 = vmatmul.mubr.bf16.gmra.mrb[36].mxu0 %v3113_v3  ;;  %937 = vmatmul.mubr.bf16.gmra.mrb[36].mxu1 %v3113_v3 }
  0xd8   : > { %753 = vmatprep.mubr.bf16.mxu0 %v3445_v0  ;;  %946 = vmatprep.mubr.bf16.mxu1 %v3445_v0 }
  0xdf   : > { %754 = vmatmul.mubr.bf16.gmra.mrb[40].mxu0 %v3114_v4  ;;  %947 = vmatmul.mubr.bf16.gmra.mrb[40].mxu1 %v3114_v4 }
  0xe0   : > { %763 = vmatprep.mubr.bf16.mxu0 %v3445_v0  ;;  %956 = vmatprep.mubr.bf16.mxu1 %v3445_v0 }
  0xe7   : > { %764 = vmatmul.mubr.bf16.gmra.mrb[44].mxu0 %v3115_v5  ;;  %957 = vmatmul.mubr.bf16.gmra.mrb[44].mxu1 %v3115_v5 }
  0xe8   : > { %773 = vmatprep.mubr.bf16.mxu0 %v3445_v0  ;;  %966 = vmatprep.mubr.bf16.mxu1 %v3445_v0 }
  0xef   : > { %774 = vmatmul.mubr.bf16.gmra.mrb[48].mxu0 %v3116_v6  ;;  %967 = vmatmul.mubr.bf16.gmra.mrb[48].mxu1 %v3116_v6 }
  0xf0   : > { %783 = vmatprep.mubr.bf16.mxu0 %v3445_v0  ;;  %976 = vmatprep.mubr.bf16.mxu1 %v3445_v0 }
  0xf7   : > { %784 = vmatmul.mubr.bf16.gmra.mrb[52].mxu0 %v3117_v7  ;;  %977 = vmatmul.mubr.bf16.gmra.mrb[52].mxu1 %v3117_v7 }
  0xf8   : > { %793 = vmatprep.mubr.bf16.mxu0 %v3445_v0  ;;  %986 = vmatprep.mubr.bf16.mxu1 %v3445_v0 }
  0xff   : > { %794 = vmatmul.mubr.bf16.gmra.mrb[56].mxu0 %v3118_v8  ;;  %987 = vmatmul.mubr.bf16.gmra.mrb[56].mxu1 %v3118_v8 }
 0x100   : > { %803 = vmatprep.mubr.bf16.mxu0 %v3445_v0  ;;  %996 = vmatprep.mubr.bf16.mxu1 %v3445_v0  ;;  %v347_v0 = vsub.s32 0, %v346_v19 }
 0x102   : > { %v3728_v26 = vrot.slane %v343_v22, %v347_v0 }
 0x107   : > { %804 = vmatmul.mubr.bf16.gmra.mrb[60].mxu0 %v3120_v15  ;;  %997 = vmatmul.mubr.bf16.gmra.mrb[60].mxu1 %v3120_v15 }
 0x162   : > { %v655_v27 = vpop.f32.mrb[0].mxu0  ;;  %v848_v28 = vpop.f32.mrb[0].mxu1 }
 0x163   : > { %v849_v30 = vadd.f32 %v848_v28, %v3724_v24  ;;  %v657_v31 = vpop.f32.mrb[1].mxu0  ;;  %v850_v32 = vpop.f32.mrb[1].mxu1  ;;  %v656_v36 = vadd.f32 %v655_v27, %v3728_v26 }
 0x164   : > { %v851_v33 = vadd.f32 %v850_v32, %v3726_v25  ;;  %v659_v34 = vpop.f32.mrb[2].mxu0  ;;  %v852_v35 = vpop.f32.mrb[2].mxu1  ;;  %v658_v41 = vadd.f32 %v657_v31, %v3730_v29 }
 0x165   : > { %v660_v37 = vadd.f32 %v659_v34, %v3728_v26  ;;  %v853_v38 = vadd.f32 %v852_v35, %v3724_v24  ;;  %v661_v39 = vpop.f32.mrb[3].mxu0  ;;  %v854_v40 = vpop.f32.mrb[3].mxu1 }
 0x166   : > { %v662_v42 = vadd.f32 %v661_v39, %v3730_v29  ;;  %v855_v43 = vadd.f32 %v854_v40, %v3726_v25 }
 0x167   : > { %v3740_v44 = vpack.c.bf16 %v660_v37, %v656_v36  ;;  %v3742_v45 = vpack.c.bf16 %v853_v38, %v849_v30 }
 0x168   : > { %v3744_v46 = vpack.c.bf16 %v662_v42, %v658_v41  ;;  %v3746_v47 = vpack.c.bf16 %v855_v43, %v851_v33 }
 0x169   : > { %v1071_v48 = vmul.bf16 %v3740_v44, %v3740_v44  ;;  %v1073_v49 = vmul.bf16 %v3742_v45, %v3742_v45 }
 0x16a   : > { %v1072_v50 = vmul.bf16 %v3744_v46, %v3744_v46  ;;  %v1074_v51 = vmul.bf16 %v3746_v47, %v3746_v47  ;;  %v665_v52 = vpop.f32.mrb[4].mxu0  ;;  %v858_v53 = vpop.f32.mrb[4].mxu1 }
 0x16b   : > { %v1135_v54 = vmul.bf16 %v1071_v48, %v3740_v44  ;;  %v1137_v55 = vmul.bf16 %v1073_v49, %v3742_v45  ;;  %v666_v56 = vadd.f32 %v665_v52, %v3728_v26  ;;  %v859_v57 = vadd.f32 %v858_v53, %v3724_v24  ;;  %v667_v58 = vpop.f32.mrb[5].mxu0  ;;  %v860_v59 = vpop.f32.mrb[5].mxu1 }
 0x16c   : > { %v1136_v60 = vmul.bf16 %v1072_v50, %v3744_v46  ;;  %v1138_v61 = vmul.bf16 %v1074_v51, %v3746_v47  ;;  %v668_v62 = vadd.f32 %v667_v58, %v3730_v29  ;;  %v861_v63 = vadd.f32 %v860_v59, %v3726_v25  ;;  %v669_v1 = vpop.f32.mrb[6].mxu0  ;;  %v862_v2 = vpop.f32.mrb[6].mxu1 }
 0x16d   : > { %v1199_v3 = vmul.bf16 1027030327, %v1135_v54  ;;  %v1201_v4 = vmul.bf16 1027030327, %v1137_v55  ;;  %v670_v5 = vadd.f32 %v669_v1, %v3728_v26  ;;  %v863_v6 = vadd.f32 %v862_v2, %v3724_v24  ;;  %v671_v7 = vpop.f32.mrb[7].mxu0  ;;  %v864_v8 = vpop.f32.mrb[7].mxu1 }
 0x16e   : > { %v1200_v9 = vmul.bf16 1027030327, %v1136_v60  ;;  %v1202_v10 = vmul.bf16 1027030327, %v1138_v61  ;;  %v672_v11 = vadd.f32 %v671_v7, %v3730_v29  ;;  %v865_v12 = vadd.f32 %v864_v8, %v3726_v25 }
 0x16f   : > { %v1263_v13 = vadd.bf16 %v1199_v3, %v3740_v44  ;;  %v1265_v14 = vadd.bf16 %v1201_v4, %v3742_v45  ;;  %v3770_v15 = vpack.c.bf16 %v670_v5, %v666_v56  ;;  %v3772_v16 = vpack.c.bf16 %v863_v6, %v859_v57 }
 0x170   : > { %v3774_v17 = vpack.c.bf16 %v672_v11, %v668_v62  ;;  %v3776_v18 = vpack.c.bf16 %v865_v12, %v861_v63  ;;  %v1264_v19 = vadd.bf16 %v1200_v9, %v3744_v46  ;;  %v1266_v20 = vadd.bf16 %v1202_v10, %v3746_v47 }
 0x171   : > { %v1327_v21 = vmul.bf16 1061961548, %v1263_v13  ;;  %v1329_v0 = vmul.bf16 1061961548, %v1265_v14  ;;  %v1075_v22 = vmul.bf16 %v3770_v15, %v3770_v15  ;;  %v1077_v23 = vmul.bf16 %v3772_v16, %v3772_v16 }
 0x172   : > { %v1076_v27 = vmul.bf16 %v3774_v17, %v3774_v17  ;;  %v1078_v28 = vmul.bf16 %v3776_v18, %v3776_v18  ;;  %v675_v30 = vpop.f32.mrb[8].mxu0  ;;  %v868_v31 = vpop.f32.mrb[8].mxu1  ;;  %v1328_v32 = vmul.bf16 1061961548, %v1264_v19  ;;  %v1330_v33 = vmul.bf16 1061961548, %v1266_v20 }
 0x173   : > { %3152 = vtanh.bf16 %v1327_v21  ;;  %v1139_v34 = vmul.bf16 %v1075_v22, %v3770_v15  ;;  %v1141_v35 = vmul.bf16 %v1077_v23, %v3772_v16  ;;  %v676_v36 = vadd.f32 %v675_v30, %v3728_v26  ;;  %v677_v37 = vpop.f32.mrb[9].mxu0  ;;  %v870_v38 = vpop.f32.mrb[9].mxu1 }
 0x174   : > { %3154 = vtanh.bf16 %v1329_v0  ;;  %v1140_v39 = vmul.bf16 %v1076_v27, %v3774_v17  ;;  %v1142_v40 = vmul.bf16 %v1078_v28, %v3776_v18  ;;  %v869_v41 = vadd.f32 %v868_v31, %v3724_v24  ;;  %v679_v42 = vpop.f32.mrb[10].mxu0  ;;  %v872_v43 = vpop.f32.mrb[10].mxu1 }
 0x175   : > { %v1203_v48 = vmul.bf16 1027030327, %v1139_v34  ;;  %v1205_v49 = vmul.bf16 1027030327, %v1141_v35  ;;  %v678_v50 = vadd.f32 %v677_v37, %v3730_v29  ;;  %v871_v51 = vadd.f32 %v870_v38, %v3726_v25  ;;  %v681_v52 = vpop.f32.mrb[11].mxu0  ;;  %v874_v53 = vpop.f32.mrb[11].mxu1 }
 0x176   : > { %v1204_v54 = vmul.bf16 1027030327, %v1140_v39  ;;  %v1206_v55 = vmul.bf16 1027030327, %v1142_v40  ;;  %v680_v56 = vadd.f32 %v679_v42, %v3728_v26  ;;  %v873_v57 = vadd.f32 %v872_v43, %v3724_v24 }
 0x177   : > { %v682_v58 = vadd.f32 %v681_v52, %v3730_v29  ;;  %v875_v59 = vadd.f32 %v874_v53, %v3726_v25  ;;  %3156 = vtanh.bf16 %v1328_v32  ;;  %v3801_v60 = vadd.bf16 %v1203_v48, %v3770_v15 }
 0x178   : > { %v3803_v61 = vpack.c.bf16 %v680_v56, %v676_v36  ;;  %v3805_v62 = vpack.c.bf16 %v873_v57, %v869_v41  ;;  %3158 = vtanh.bf16 %v1330_v33  ;;  %v1268_v63 = vadd.bf16 %v1204_v54, %v3774_v17 }
 0x179   : > { %v3808_v1 = vpack.c.bf16 %v682_v58, %v678_v50  ;;  %v3810_v2 = vpack.c.bf16 %v875_v59, %v871_v51  ;;  %v3813_v3 = vadd.bf16 %v1206_v55, %v3776_v18  ;;  %v1331_v4 = vmul.bf16 1061961548, %v3801_v60 }
 0x17a   : > { %v1079_v5 = vmul.bf16 %v3803_v61, %v3803_v61  ;;  %v1081_v6 = vmul.bf16 %v3805_v62, %v3805_v62  ;;  %v685_v7 = vpop.f32.mrb[12].mxu0  ;;  %v878_v8 = vpop.f32.mrb[12].mxu1  ;;  %v1332_v9 = vmul.bf16 1061961548, %v1268_v63  ;;  %v3821_v10 = vadd.bf16 %v1205_v49, %v3772_v16 }
 0x17b   : > { %v1080_v11 = vmul.bf16 %v3808_v1, %v3808_v1  ;;  %v1082_v12 = vmul.bf16 %v3810_v2, %v3810_v2  ;;  %v686_v13 = vadd.f32 %v685_v7, %v3728_v26  ;;  %v879_v14 = vadd.f32 %v878_v8, %v3724_v24  ;;  %v687_v19 = vpop.f32.mrb[13].mxu0  ;;  %v880_v20 = vpop.f32.mrb[13].mxu1 }
 0x17c   : > { %v3830_v21 = vmul.bf16 %v1079_v5, %v3803_v61  ;;  %v3833_v0 = vmul.bf16 %v1081_v6, %v3805_v62  ;;  %v688_v22 = vadd.f32 %v687_v19, %v3730_v29  ;;  %v881_v23 = vadd.f32 %v880_v20, %v3726_v25  ;;  %v689_v27 = vpop.f32.mrb[14].mxu0  ;;  %v882_v28 = vpop.f32.mrb[14].mxu1 }
 0x17d   : > { %v3838_v30 = vmul.bf16 %v1080_v11, %v3808_v1  ;;  %v3841_v31 = vmul.bf16 %v1082_v12, %v3810_v2  ;;  %v690_v32 = vadd.f32 %v689_v27, %v3728_v26  ;;  %v883_v33 = vadd.f32 %v882_v28, %v3724_v24  ;;  %v691_v34 = vpop.f32.mrb[15].mxu0  ;;  %v884_v35 = vpop.f32.mrb[15].mxu1 }
 0x17e   : > { %v3153_v36 = vpop.eup %3152  ;;  %v1207_v37 = vmul.bf16 1027030327, %v3830_v21  ;;  %v1209_v38 = vmul.bf16 1027030327, %v3833_v0  ;;  %v692_v39 = vadd.f32 %v691_v34, %v3730_v29  ;;  %v885_v40 = vadd.f32 %v884_v35, %v3726_v25 }
 0x17f   : > { %v3155_v41 = vpop.eup %3154  ;;  %v1455_v42 = vadd.bf16 1065369472, %v3153_v36  ;;  %v1208_v43 = vmul.bf16 1027030327, %v3838_v30  ;;  %v1210_v48 = vmul.bf16 1027030327, %v3841_v31  ;;  %v3851_v49 = vpack.c.bf16 %v690_v32, %v686_v13 }
 0x180   : > { %v1457_v50 = vadd.bf16 1065369472, %v3155_v41  ;;  %v3853_v51 = vpack.c.bf16 %v883_v33, %v879_v14  ;;  %v3855_v52 = vpack.c.bf16 %v692_v39, %v688_v22  ;;  %v3857_v53 = vpack.c.bf16 %v885_v40, %v881_v23 }
 0x181   : > { %v3859_v54 = vmul.bf16 1056980736, %v1455_v42  ;;  %v1083_v55 = vmul.bf16 %v3851_v49, %v3851_v49  ;;  %3160 = vtanh.bf16 %v1332_v9  ;;  %v1334_v56 = vmul.bf16 1061961548, %v3813_v3 }
 0x182   : > { %v3157_v57 = vpop.eup %3156  ;;  %v3864_v58 = vmul.bf16 1056980736, %v1457_v50  ;;  %v1085_v59 = vmul.bf16 %v3853_v51, %v3853_v51  ;;  %v1084_v63 = vmul.bf16 %v3855_v52, %v3855_v52  ;;  %v1086_v5 = vmul.bf16 %v3857_v53, %v3857_v53  ;;  %v695_v6 = vpop.f32.mrb[16].mxu0 }
 0x183   : > { %v888_v7 = vpop.f32.mrb[16].mxu1  ;;  %v3159_v8 = vpop.eup %3158  ;;  %v1583_v9 = vmul.bf16 %v3859_v54, %v3740_v44  ;;  %v3875_v3 = vmul.bf16 %v1083_v55, %v3851_v49  ;;  %v696_v11 = vadd.f32 %v695_v6, %v3728_v26  ;;  %v1456_v54 = vadd.bf16 1065369472, %v3157_v57 }
 0x184   : > { %v889_v12 = vadd.f32 %v888_v7, %v3724_v24  ;;  %v697_v13 = vpop.f32.mrb[17].mxu0  ;;  %v890_v14 = vpop.f32.mrb[17].mxu1  ;;  %v1585_v19 = vmul.bf16 %v3864_v58, %v3742_v45  ;;  %v3882_v20 = vmul.bf16 %v1085_v59, %v3853_v51  ;;  %v3885_v22 = vmul.bf16 %v1084_v63, %v3855_v52 }
 0x185   : > { %v3888_v44 = vmul.bf16 %v1086_v5, %v3857_v53  ;;  %v699_v23 = vpop.f32.mrb[18].mxu0  ;;  %v892_v27 = vpop.f32.mrb[18].mxu1  ;;  %v698_v30 = vadd.f32 %v697_v13, %v3730_v29  ;;  %v891_v32 = vadd.f32 %v890_v14, %v3726_v25  ;;  %v1458_v58 = vadd.bf16 1065369472, %v3159_v8 }
 0x186   : > { %v700_v33 = vadd.f32 %v699_v23, %v3728_v26  ;;  %v701_v45 = vpop.f32.mrb[19].mxu0  ;;  %v894_v34 = vpop.f32.mrb[19].mxu1  ;;  %v1212_v36 = vmul.bf16 1027030327, %v3885_v22  ;;  %v893_v40 = vadd.f32 %v892_v27, %v3724_v24  ;;  %3162 = vtanh.bf16 %v1334_v56 }
 0x187   : > { %v1214_v39 = vmul.bf16 1027030327, %v3888_v44  ;;  %v702_v42 = vadd.f32 %v701_v45, %v3730_v29  ;;  %v895_v50 = vadd.f32 %v894_v34, %v3726_v25  ;;  %v1333_v59 = vmul.bf16 1061961548, %v3821_v10 }
 0x188   : > { %v3898_v41 = vpack.c.bf16 %v700_v33, %v696_v11  ;;  %v3902_v55 = vpack.c.bf16 %v893_v40, %v889_v12  ;;  %v1520_v7 = vmul.bf16 1056980736, %v1456_v54  ;;  %v1522_v13 = vmul.bf16 1056980736, %v1458_v58 }
 0x189   : > { %v3907_v5 = vpack.c.bf16 %v702_v42, %v698_v30  ;;  %v3909_v6 = vpack.c.bf16 %v895_v50, %v891_v32  ;;  %3164 = vtanh.bf16 %v1331_v4  ;;  %v3916_v56 = vadd.bf16 %v1208_v43, %v3808_v1 }
 0x18a   : > { %v1087_v63 = vmul.bf16 %v3898_v41, %v3898_v41  ;;  %v1089_v11 = vmul.bf16 %v3902_v55, %v3902_v55  ;;  %v705_v14 = vpop.f32.mrb[20].mxu0  ;;  %v898_v57 = vpop.f32.mrb[20].mxu1  ;;  %v1584_v23 = vmul.bf16 %v1520_v7, %v3744_v46  ;;  %v1586_v4 = vmul.bf16 %v1522_v13, %v3746_v47 }
 0x18b   : > { %v1088_v8 = vmul.bf16 %v3907_v5, %v3907_v5  ;;  %v1090_v12 = vmul.bf16 %v3909_v6, %v3909_v6  ;;  %v707_v27 = vpop.f32.mrb[21].mxu0  ;;  %v900_v30 = vpop.f32.mrb[21].mxu1  ;;  %v706_v43 = vadd.f32 %v705_v14, %v3728_v26  ;;  %v899_v33 = vadd.f32 %v898_v57, %v3724_v24 }
 0x18c   : > { %v3919_v10 = vmul.bf16 %v1087_v63, %v3898_v41  ;;  %v3161_v32 = vpop.eup %3160  ;;  %v3927_v60 = vmul.bf16 %v1089_v11, %v3902_v55  ;;  %v709_v45 = vpop.f32.mrb[22].mxu0  ;;  %1942 = vmatprep.mubr.bf16.mxu0 %v1584_v23  ;;  %v708_v50 = vadd.f32 %v707_v27, %v3730_v29  ;;  %2103 = vmatprep.mubr.bf16.mxu1 %v1586_v4  ;;  %3166 = vtanh.bf16 %v1333_v59 }
 0x18d   : > { %v902_v34 = vpop.f32.mrb[22].mxu1  ;;  %v3934_v42 = vmul.bf16 %v1088_v8, %v3907_v5  ;;  %v3937_v46 = vmul.bf16 %v1090_v12, %v3909_v6  ;;  %v711_v54 = vpop.f32.mrb[23].mxu0  ;;  %1943 = vmatmul.mubr.bf16.vlgmr.msra.gmra.mrb[64].mxu0 %v1583_v9  ;;  %v901_v63 = vadd.f32 %v900_v30, %v3726_v25  ;;  %v710_v7 = vadd.f32 %v709_v45, %v3728_v26 }
 0x18e   : > { %v904_v58 = vpop.f32.mrb[23].mxu1  ;;  %v903_v11 = vadd.f32 %v902_v34, %v3724_v24  ;;  %2104 = vmatmul.mubr.bf16.vlgmr.msra.gmra.mrb[64].mxu1 %v1585_v19  ;;  %v712_v57 = vadd.f32 %v711_v54, %v3730_v29  ;;  %v1460_v9 = vadd.bf16 1065369472, %v3161_v32  ;;  %v1336_v4 = vmul.bf16 1061961548, %v3916_v56 }
 0x18f   : > { %v905_v8 = vadd.f32 %v904_v58, %v3726_v25  ;;  %v3948_v12 = vpack.c.bf16 %v710_v7, %v706_v43  ;;  %v1274_v19 = vadd.bf16 %v1210_v48, %v3810_v2  ;;  %v1271_v59 = vadd.bf16 %v1207_v37, %v3803_v61 }
 0x190   : > { %v3950_v23 = vpack.c.bf16 %v903_v11, %v899_v33  ;;  %v3952_v27 = vpack.c.bf16 %v712_v57, %v708_v50  ;;  %v1524_v33 = vmul.bf16 1056980736, %v1460_v9  ;;  %3168 = vtanh.bf16 %v1336_v4 }
 0x191   : > { %v3954_v30 = vpack.c.bf16 %v905_v8, %v901_v63  ;;  %v1091_v45 = vmul.bf16 %v3948_v12, %v3948_v12  ;;  %v3163_v50 = vpop.eup %3162 }
 0x192   : > { %v1093_v43 = vmul.bf16 %v3950_v23, %v3950_v23  ;;  %v715_v34 = vpop.f32.mrb[24].mxu0  ;;  %v908_v32 = vpop.f32.mrb[24].mxu1  ;;  %v1092_v56 = vmul.bf16 %v3952_v27, %v3952_v27  ;;  %v1588_v21 = vmul.bf16 %v1524_v33, %v3774_v17  ;;  %v1462_v37 = vadd.bf16 1065369472, %v3163_v50 }
 0x193   : > { %v1094_v31 = vmul.bf16 %v3954_v30, %v3954_v30  ;;  %v716_v48 = vadd.f32 %v715_v34, %v3728_v26  ;;  %v909_v54 = vadd.f32 %v908_v32, %v3724_v24  ;;  %v717_v58 = vpop.f32.mrb[25].mxu0  ;;  %v910_v63 = vpop.f32.mrb[25].mxu1  ;;  %v3974_v7 = vmul.bf16 %v1091_v45, %v3948_v12 }
 0x194   : > { %v3977_v11 = vmul.bf16 %v1093_v43, %v3950_v23  ;;  %v719_v57 = vpop.f32.mrb[26].mxu0  ;;  %v912_v8 = vpop.f32.mrb[26].mxu1  ;;  %v3981_v47 = vmul.bf16 %v1092_v56, %v3952_v27  ;;  %v718_v32 = vadd.f32 %v717_v58, %v3730_v29  ;;  %v911_v45 = vadd.f32 %v910_v63, %v3726_v25  ;;  %1950 = vmatprep.mubr.bf16.mxu0 %v1588_v21 }
 0x195   : > { %v3165_v9 = vpop.eup %3164  ;;  %v3984_v34 = vmul.bf16 %v1094_v31, %v3954_v30  ;;  %v721_v40 = vpop.f32.mrb[27].mxu0  ;;  %v1526_v33 = vmul.bf16 1056980736, %v1462_v37  ;;  %v720_v50 = vadd.f32 %v719_v57, %v3728_v26  ;;  %v913_v35 = vadd.f32 %v912_v8, %v3724_v24 }
 0x196   : > { %v914_v14 = vpop.f32.mrb[27].mxu1  ;;  %v1459_v31 = vadd.bf16 1065369472, %v3165_v9  ;;  %v722_v28 = vadd.f32 %v721_v40, %v3730_v29  ;;  %v1338_v37 = vmul.bf16 1061961548, %v1274_v19 }
 0x197   : > { %v1590_v58 = vmul.bf16 %v1526_v33, %v3776_v18  ;;  %v3995_v63 = vpack.c.bf16 %v720_v50, %v716_v48  ;;  %v915_v43 = vadd.f32 %v914_v14, %v3726_v25  ;;  %v3999_v21 = vpack.c.bf16 %v913_v35, %v909_v54  ;;  %v3167_v50 = vpop.eup %3166 }
 0x198   : > { %v1523_v17 = vmul.bf16 1056980736, %v1459_v31  ;;  %v4003_v9 = vpack.c.bf16 %v722_v28, %v718_v32  ;;  %v1335_v18 = vmul.bf16 1061961548, %v1271_v59  ;;  %3170 = vtanh.bf16 %v1338_v37 }
 0x199   : > { %4903 = vst [vmem:[#allocation12_spill] sm:$0xff] %v3999_v21  ;;  %2111 = vmatprep.mubr.bf16.mxu1 %v1590_v58  ;;  %v1095_v57 = vmul.bf16 %v3995_v63, %v3995_v63  ;;  %v4005_v8 = vpack.c.bf16 %v915_v43, %v911_v45  ;;  %v1097_v35 = vmul.bf16 %v3999_v21, %v3999_v21  ;;  %v1461_v28 = vadd.bf16 1065369472, %v3167_v50 }
 0x19a   : > { %v725_v48 = vpop.f32.mrb[28].mxu0  ;;  %v918_v33 = vpop.f32.mrb[28].mxu1  ;;  %v1587_v40 = vmul.bf16 %v1523_v17, %v3770_v15  ;;  %v1273_v14 = vadd.bf16 %v1209_v38, %v3805_v62  ;;  %v1096_v59 = vmul.bf16 %v4003_v9, %v4003_v9  ;;  %3172 = vtanh.bf16 %v1335_v18 }
 0x19b   : > { %v727_v4 = vpop.f32.mrb[29].mxu0  ;;  %v920_v19 = vpop.f32.mrb[29].mxu1  ;;  %v4014_v54 = vmul.bf16 %v1095_v57, %v3995_v63  ;;  %v1098_v15 = vmul.bf16 %v4005_v8, %v4005_v8  ;;  %v4021_v43 = vmul.bf16 %v1097_v35, %v3999_v21  ;;  %v726_v38 = vadd.f32 %v725_v48, %v3728_v26 }
 0x19c   : > { %v729_v32 = vpop.f32.mrb[30].mxu0  ;;  %v922_v45 = vpop.f32.mrb[30].mxu1  ;;  %1951 = vmatmul.mubr.bf16.gmra.mrb[68].mxu0 %v1587_v40  ;;  %v1337_v0 = vmul.bf16 1061961548, %v1273_v14  ;;  %v1525_v58 = vmul.bf16 1056980736, %v1461_v28  ;;  %v4026_v57 = vmul.bf16 %v1096_v59, %v4003_v9  ;;  %v919_v35 = vadd.f32 %v918_v33, %v3724_v24 }
 0x19d   : > { %4904 = vst [vmem:[#allocation13_spill] sm:$0xff] %v4014_v54  ;;  %4905 = vst [vmem:[#allocation14_spill] sm:$0xff] %v4021_v43  ;;  %v731_v17 = vpop.f32.mrb[31].mxu0  ;;  %v924_v31 = vpop.f32.mrb[31].mxu1  ;;  %v4029_v50 = vmul.bf16 %v1098_v15, %v4005_v8  ;;  %v728_v18 = vadd.f32 %v727_v4, %v3730_v29  ;;  %v921_v37 = vadd.f32 %v920_v19, %v3726_v25  ;;  %v4906_v4 = vmul.bf16 1027030327, %v3875_v3 }
 0x19e   : > { %3174 = vtanh.bf16 %v1337_v0  ;;  %v1589_v48 = vmul.bf16 %v1525_v58, %v3772_v16  ;;  %v730_v59 = vadd.f32 %v729_v32, %v3728_v26  ;;  %v923_v15 = vadd.f32 %v922_v45, %v3724_v24  ;;  %v3169_v40 = vpop.eup %3168 }
 0x19f   : > { %v732_v13 = vadd.f32 %v731_v17, %v3730_v29  ;;  %v925_v0 = vadd.f32 %v924_v31, %v3726_v25  ;;  %v1276_v33 = vadd.bf16 %v1212_v36, %v3855_v52  ;;  %v1278_v16 = vadd.bf16 %v1214_v39, %v3857_v53 }
 0x1a0   : > { %2112 = vmatmul.mubr.bf16.gmra.mrb[68].mxu1 %v1589_v48  ;;  %v1275_v19 = vadd.bf16 %v4906_v4, %v3851_v49  ;;  %v4907_v32 = vmul.bf16 1027030327, %v3882_v20  ;;  %v4054_v31 = vpack.c.bf16 %v730_v59, %v726_v38  ;;  %v4056_v48 = vpack.c.bf16 %v923_v15, %v919_v35 }
 0x1a1   : > { %v4058_v22 = vpack.c.bf16 %v732_v13, %v728_v18  ;;  %v4060_v36 = vpack.c.bf16 %v925_v0, %v921_v37  ;;  %v1340_v28 = vmul.bf16 1061961548, %v1276_v33  ;;  %v1342_v3 = vmul.bf16 1061961548, %v1278_v16 }
 0x1a2   : > { %v1277_v45 = vadd.bf16 %v4907_v32, %v3853_v51  ;;  %v735_v17 = vpop.f32.mrb[32].mxu0  ;;  %v928_v58 = vpop.f32.mrb[32].mxu1  ;;  %4908 = vst [vmem:[#allocation15_spill] sm:$0xff] %v4054_v31  ;;  %4909 = vst [vmem:[#allocation16_spill] sm:$0xff] %v4056_v48  ;;  %v1339_v4 = vmul.bf16 1061961548, %v1275_v19  ;;  %v1099_v32 = vmul.bf16 %v4054_v31, %v4054_v31  ;;  %v1101_v38 = vmul.bf16 %v4056_v48, %v4056_v48 }
 0x1a3   : > { %v737_v44 = vpop.f32.mrb[33].mxu0  ;;  %v930_v39 = vpop.f32.mrb[33].mxu1  ;;  %v736_v14 = vadd.f32 %v735_v17, %v3728_v26  ;;  %v1464_v20 = vadd.bf16 1065369472, %v3169_v40  ;;  %v1100_v13 = vmul.bf16 %v4058_v22, %v4058_v22  ;;  %v1102_v59 = vmul.bf16 %v4060_v36, %v4060_v36 }
 0x1a4   : > { %v739_v37 = vpop.f32.mrb[34].mxu0  ;;  %v932_v35 = vpop.f32.mrb[34].mxu1  ;;  %3176 = vtanh.bf16 %v1340_v28  ;;  %v1341_v15 = vmul.bf16 1061961548, %v1277_v45  ;;  %v929_v0 = vadd.f32 %v928_v58, %v3724_v24  ;;  %v4073_v17 = vmul.bf16 %v1099_v32, %v4054_v31 }
 0x1a5   : > { %v3171_v18 = vpop.eup %3170  ;;  %v741_v40 = vpop.f32.mrb[35].mxu0  ;;  %v1528_v16 = vmul.bf16 1056980736, %v1464_v20  ;;  %v4076_v56 = vmul.bf16 %v1101_v38, %v4056_v48  ;;  %v4079_v21 = vmul.bf16 %v1100_v13, %v4058_v22  ;;  %v4082_v54 = vmul.bf16 %v1102_v59, %v4060_v36 }
 0x1a6   : > { %v934_v33 = vpop.f32.mrb[35].mxu1  ;;  %v1466_v19 = vadd.bf16 1065369472, %v3171_v18  ;;  %v3173_v43 = vpop.eup %3172  ;;  %3178 = vtanh.bf16 %v1342_v3  ;;  %v738_v28 = vadd.f32 %v737_v44, %v3730_v29  ;;  %v742_v38 = vadd.f32 %v741_v40, %v3730_v29 }
 0x1a7   : > { %v1592_v45 = vmul.bf16 %v1528_v16, %v3808_v1  ;;  %v1463_v20 = vadd.bf16 1065369472, %v3173_v43  ;;  %3180 = vtanh.bf16 %v1339_v4  ;;  %v931_v43 = vadd.f32 %v930_v39, %v3726_v25 }
 0x1a8   : > { %v1530_v58 = vmul.bf16 1056980736, %v1466_v19  ;;  %3182 = vtanh.bf16 %v1341_v15  ;;  %v740_v16 = vadd.f32 %v739_v37, %v3728_v26  ;;  %v933_v19 = vadd.f32 %v932_v35, %v3724_v24 }
 0x1a9   : > { %v3175_v18 = vpop.eup %3174  ;;  %1958 = vmatprep.mubr.bf16.mxu0 %v1592_v45  ;;  %v1527_v3 = vmul.bf16 1056980736, %v1463_v20  ;;  %v4910_v15 = vmul.bf16 1027030327, %v3934_v42  ;;  %v4104_v35 = vpack.c.bf16 %v742_v38, %v738_v28  ;;  %v4913_v40 = vmul.bf16 1027030327, %v3937_v46 }
 0x1aa   : > { %v1594_v59 = vmul.bf16 %v1530_v58, %v3810_v2  ;;  %v1465_v31 = vadd.bf16 1065369472, %v3175_v18  ;;  %v745_v44 = vpop.f32.mrb[36].mxu0  ;;  %v938_v1 = vpop.f32.mrb[36].mxu1  ;;  %v935_v2 = vadd.f32 %v934_v33, %v3726_v25  ;;  %v4100_v18 = vpack.c.bf16 %v740_v16, %v736_v14 }
 0x1ab   : > { %v747_v32 = vpop.f32.mrb[37].mxu0  ;;  %v940_v48 = vpop.f32.mrb[37].mxu1  ;;  %v1591_v4 = vmul.bf16 %v1527_v3, %v3803_v61  ;;  %v1280_v58 = vadd.bf16 %v4910_v15, %v3907_v5  ;;  %v4102_v37 = vpack.c.bf16 %v933_v19, %v929_v0  ;;  %v4915_v14 = vmul.bf16 1027030327, %v3919_v10 }
 0x1ac   : > { %2119 = vmatprep.mubr.bf16.mxu1 %v1594_v59  ;;  %v1529_v45 = vmul.bf16 1056980736, %v1465_v31  ;;  %v749_v20 = vpop.f32.mrb[38].mxu0  ;;  %v942_v39 = vpop.f32.mrb[38].mxu1  ;;  %4911 = vst [vmem:[#allocation17_spill] sm:$0xff] %v4100_v18  ;;  %v1282_v59 = vadd.bf16 %v4913_v40, %v3909_v6  ;;  %v4110_v3 = vpack.c.bf16 %v935_v2, %v931_v43  ;;  %v1103_v0 = vmul.bf16 %v4100_v18, %v4100_v18 }
 0x1ad   : > { %4912 = vst [vmem:[#allocation18_spill] sm:$0xff] %v4102_v37  ;;  %v751_v61 = vpop.f32.mrb[39].mxu0  ;;  %v944_v31 = vpop.f32.mrb[39].mxu1  ;;  %1959 = vmatmul.mubr.bf16.gmra.mrb[72].mxu0 %v1591_v4  ;;  %v1344_v42 = vmul.bf16 1061961548, %v1280_v58  ;;  %v1279_v16 = vadd.bf16 %v4915_v14, %v3898_v41  ;;  %v1105_v28 = vmul.bf16 %v4102_v37, %v4102_v37  ;;  %v1104_v46 = vmul.bf16 %v4104_v35, %v4104_v35 }
 0x1ae   : > { %v1593_v33 = vmul.bf16 %v1529_v45, %v3805_v62  ;;  %4914 = vst [vmem:[#allocation19_spill] sm:$0xff] %v4110_v3  ;;  %v1346_v38 = vmul.bf16 1061961548, %v1282_v59  ;;  %v1106_v62 = vmul.bf16 %v4110_v3, %v4110_v3  ;;  %v4916_v10 = vmul.bf16 1027030327, %v3927_v60 }
 0x1af   : > { %v3177_v19 = vpop.eup %3176  ;;  %3184 = vtanh.bf16 %v1344_v42  ;;  %v1343_v43 = vmul.bf16 1061961548, %v1279_v16  ;;  %v4127_v2 = vmul.bf16 %v1103_v0, %v4100_v18  ;;  %v4130_v15 = vmul.bf16 %v1105_v28, %v4102_v37 }
 0x1b0   : > { %2120 = vmatmul.mubr.bf16.gmra.mrb[72].mxu1 %v1593_v33  ;;  %v1281_v4 = vadd.bf16 %v4916_v10, %v3902_v55  ;;  %v1468_v45 = vadd.bf16 1065369472, %v3177_v19  ;;  %v4133_v58 = vmul.bf16 %v1104_v46, %v4104_v35  ;;  %v4140_v42 = vmul.bf16 %v1106_v62, %v4110_v3 }
 0x1b1   : > { %4917 = vst [vmem:[#allocation20_spill] sm:$0xff] %v4127_v2  ;;  %4918 = vst [vmem:[#allocation21_spill] sm:$0xff] %v4130_v15  ;;  %v3179_v33 = vpop.eup %3178  ;;  %3186 = vtanh.bf16 %v1346_v38  ;;  %v746_v14 = vadd.f32 %v745_v44, %v3728_v26  ;;  %v939_v3 = vadd.f32 %v938_v1, %v3724_v24  ;;  %v748_v46 = vadd.f32 %v747_v32, %v3730_v29 }
 0x1b2   : > { %v4135_v40 = vpop.f32.mrb[40].mxu0  ;;  %v4137_v59 = vpop.f32.mrb[40].mxu1  ;;  %4919 = vst [vmem:[#allocation22_spill] sm:$0xff] %v4140_v42  ;;  %v1345_v60 = vmul.bf16 1061961548, %v1281_v4  ;;  %3188 = vtanh.bf16 %v1343_v43  ;;  %v941_v13 = vadd.f32 %v940_v48, %v3726_v25  ;;  %v750_v37 = vadd.f32 %v749_v20, %v3728_v26 }
 0x1b3   : > { %v4143_v16 = vpop.f32.mrb[41].mxu0  ;;  %v4145_v0 = vpop.f32.mrb[41].mxu1  ;;  %v1532_v28 = vmul.bf16 1056980736, %v1468_v45  ;;  %v1470_v19 = vadd.bf16 1065369472, %v3179_v33  ;;  %v943_v1 = vadd.f32 %v942_v39, %v3724_v24  ;;  %v945_v32 = vadd.f32 %v944_v31, %v3726_v25 }
 0x1b4   : > { %v3181_v10 = vpop.eup %3180  ;;  %3190 = vtanh.bf16 %v1345_v60  ;;  %v4153_v45 = vpop.f32.mrb[42].mxu0  ;;  %v4921_v48 = vmul.bf16 1027030327, %v3981_v47  ;;  %v4923_v39 = vmul.bf16 1027030327, %v3984_v34  ;;  %v949_v2 = vadd.f32 %v4137_v59, %v3724_v24 }
 0x1b5   : > { %v3183_v38 = vpop.eup %3182  ;;  %v1596_v44 = vmul.bf16 %v1532_v28, %v3855_v52  ;;  %v1534_v4 = vmul.bf16 1056980736, %v1470_v19  ;;  %v1467_v18 = vadd.bf16 1065369472, %v3181_v10  ;;  %v4155_v33 = vpop.f32.mrb[42].mxu1  ;;  %v752_v19 = vadd.f32 %v751_v61, %v3730_v29 }
 0x1b6   : > { %v1469_v43 = vadd.bf16 1065369472, %v3183_v38  ;;  %v4160_v62 = vpop.f32.mrb[43].mxu0  ;;  %v4162_v60 = vpop.f32.mrb[43].mxu1  ;;  %v4167_v38 = vpack.c.bf16 %v750_v37, %v746_v14  ;;  %v1284_v20 = vadd.bf16 %v4921_v48, %v3952_v27  ;;  %v4188_v14 = vpack.c.bf16 %v945_v32, %v941_v13 }
 0x1b7   : > { %1966 = vmatprep.mubr.bf16.mxu0 %v1596_v44  ;;  %v1598_v52 = vmul.bf16 %v1534_v4, %v3857_v53  ;;  %v1531_v28 = vmul.bf16 1056980736, %v1467_v18  ;;  %v4174_v44 = vpack.c.bf16 %v943_v1, %v939_v3  ;;  %v4176_v53 = vpack.c.bf16 %v752_v19, %v748_v46 }
 0x1b8   : > { %v1533_v10 = vmul.bf16 1056980736, %v1469_v43  ;;  %4920 = vst [vmem:[#allocation23_spill] sm:$0xff] %v4167_v38  ;;  %v1286_v18 = vadd.bf16 %v4923_v39, %v3954_v30  ;;  %v1107_v47 = vmul.bf16 %v4167_v38, %v4167_v38 }
 0x1b9   : > { %2127 = vmatprep.mubr.bf16.mxu1 %v1598_v52  ;;  %v1595_v15 = vmul.bf16 %v1531_v28, %v3851_v49  ;;  %4922 = vst [vmem:[#allocation24_spill] sm:$0xff] %v4174_v44  ;;  %v1348_v49 = vmul.bf16 1061961548, %v1284_v20  ;;  %v1109_v34 = vmul.bf16 %v4174_v44, %v4174_v44  ;;  %v1108_v43 = vmul.bf16 %v4176_v53, %v4176_v53 }
 0x1ba   : > { %v4181_v61 = vpop.f32.mrb[44].mxu0  ;;  %v4183_v37 = vpop.f32.mrb[44].mxu1  ;;  %v1597_v31 = vmul.bf16 %v1533_v10, %v3853_v51  ;;  %v1350_v52 = vmul.bf16 1061961548, %v1286_v18  ;;  %v4924_v51 = vmul.bf16 1027030327, %v3974_v7  ;;  %v4206_v10 = vmul.bf16 %v1107_v47, %v4167_v38 }
 0x1bb   : > { %v4190_v3 = vpop.f32.mrb[45].mxu0  ;;  %v4192_v46 = vpop.f32.mrb[45].mxu1  ;;  %1967 = vmatmul.mubr.bf16.gmra.mrb[76].mxu0 %v1595_v15  ;;  %v1110_v15 = vmul.bf16 %v4188_v14, %v4188_v14  ;;  %3192 = vtanh.bf16 %v1348_v49  ;;  %v4215_v7 = vmul.bf16 %v1109_v34, %v4174_v44  ;;  %v4218_v39 = vmul.bf16 %v1108_v43, %v4176_v53 }
 0x1bc   : > { %v3185_v4 = vpop.eup %3184  ;;  %v1283_v28 = vadd.bf16 %v4924_v51, %v3948_v12  ;;  %v4201_v13 = vpop.f32.mrb[46].mxu0  ;;  %2128 = vmatmul.mubr.bf16.gmra.mrb[76].mxu1 %v1597_v31  ;;  %4925 = vst [vmem:[#allocation25_spill] sm:$0xff] %v4206_v10  ;;  %3194 = vtanh.bf16 %v1350_v52 }
 0x1bd   : > { %v4203_v1 = vpop.f32.mrb[46].mxu1  ;;  %v1472_v19 = vadd.bf16 1065369472, %v3185_v4  ;;  %v4210_v32 = vpop.f32.mrb[47].mxu0  ;;  %4926 = vst [vmem:[#allocation26_spill] sm:$0xff] %v4215_v7  ;;  %v4223_v42 = vmul.bf16 %v1110_v15, %v4188_v14 }
 0x1be   : > { %v4212_v48 = vpop.f32.mrb[47].mxu1  ;;  %v3187_v20 = vpop.eup %3186  ;;  %v1347_v18 = vmul.bf16 1061961548, %v1283_v28 }
 0x1bf   : > { %v3189_v31 = vpop.eup %3188  ;;  %v1536_v47 = vmul.bf16 1056980736, %v1472_v19  ;;  %v1474_v4 = vadd.bf16 1065369472, %v3187_v20  ;;  %4927 = vst [vmem:[#allocation27_spill] sm:$0xff] %v4223_v42 }
 0x1c0   : > { %v3191_v38 = vpop.eup %3190  ;;  %v1471_v49 = vadd.bf16 1065369472, %v3189_v31  ;;  %3196 = vtanh.bf16 %v1347_v18  ;;  %v4928_v19 = vmul.bf16 1027030327, %v3977_v11  ;;  %v756_v31 = vadd.f32 %v4135_v40, %v3728_v26 }
 0x1c1   : > { %v1600_v34 = vmul.bf16 %v1536_v47, %v3907_v5  ;;  %v1538_v44 = vmul.bf16 1056980736, %v1474_v4  ;;  %v1473_v43 = vadd.bf16 1065369472, %v3191_v38  ;;  %v758_v47 = vadd.f32 %v4143_v16, %v3730_v29 }
 0x1c2   : > { %v1535_v28 = vmul.bf16 1056980736, %v1471_v49  ;;  %v1285_v20 = vadd.bf16 %v4928_v19, %v3950_v23  ;;  %v4234_v15 = vpop.f32.mrb[48].mxu0  ;;  %v4236_v18 = vpop.f32.mrb[48].mxu1  ;;  %v951_v11 = vadd.f32 %v4145_v0, %v3726_v25  ;;  %v760_v19 = vadd.f32 %v4153_v45, %v3728_v26 }
 0x1c3   : > { %1974 = vmatprep.mubr.bf16.mxu0 %v1600_v34  ;;  %v1602_v5 = vmul.bf16 %v1538_v44, %v3909_v6  ;;  %v1537_v38 = vmul.bf16 1056980736, %v1473_v43  ;;  %v4243_v4 = vpop.f32.mrb[49].mxu0  ;;  %v4245_v40 = vpop.f32.mrb[49].mxu1  ;;  %v953_v6 = vadd.f32 %v4155_v33, %v3724_v24  ;;  %v762_v0 = vadd.f32 %v4160_v62, %v3730_v29 }
 0x1c4   : > { %v1599_v59 = vmul.bf16 %v1535_v28, %v3898_v41  ;;  %v1349_v49 = vmul.bf16 1061961548, %v1285_v20  ;;  %v4252_v44 = vpop.f32.mrb[50].mxu0  ;;  %v4254_v34 = vpop.f32.mrb[50].mxu1  ;;  %v955_v41 = vadd.f32 %v4162_v60, %v3726_v25  ;;  %v4929_v43 = vmul.bf16 1027030327, %v4026_v57 }
 0x1c5   : > { %2135 = vmatprep.mubr.bf16.mxu1 %v1602_v5  ;;  %v1601_v16 = vmul.bf16 %v1537_v38, %v3902_v55  ;;  %v4264_v28 = vpop.f32.mrb[51].mxu0  ;;  %v4266_v33 = vpop.f32.mrb[51].mxu1  ;;  %v4268_v20 = vpack.c.bf16 %v760_v19, %v756_v31  ;;  %v4270_v5 = vpack.c.bf16 %v953_v6, %v949_v2  ;;  %v4932_v55 = vmul.bf16 1027030327, %v4029_v50 }
 0x1c6   : > { %v1288_v45 = vadd.bf16 %v4929_v43, %v4003_v9  ;;  %1975 = vmatmul.mubr.bf16.gmra.mrb[80].mxu0 %v1599_v59  ;;  %3198 = vtanh.bf16 %v1349_v49  ;;  %v4275_v60 = vpack.c.bf16 %v762_v0, %v758_v47  ;;  %v4277_v38 = vpack.c.bf16 %v955_v41, %v951_v11  ;;  %v4935_v43 = vld [vmem:[#allocation13_spill] sm:$0xff]  ;;  %v3193_v59 = vpop.eup %3192  ;;  %v4938_v0 = vld [vmem:[#allocation12_spill] sm:$0xff]  ;;  %v4939_v41 = vld [vmem:[#allocation14_spill] sm:$0xff] }
 0x1c7   : > { %4930 = vst [vmem:[#allocation28_spill] sm:$0xff] %v4268_v20  ;;  %4931 = vst [vmem:[#allocation29_spill] sm:$0xff] %v4270_v5  ;;  %v1290_v62 = vadd.bf16 %v4932_v55, %v4005_v8  ;;  %2136 = vmatmul.mubr.bf16.gmra.mrb[80].mxu1 %v1601_v16  ;;  %v4936_v51 = vmul.bf16 1027030327, %v4935_v43  ;;  %v1111_v2 = vmul.bf16 %v4268_v20, %v4268_v20  ;;  %v3195_v19 = vpop.eup %3194  ;;  %v1476_v47 = vadd.bf16 1065369472, %v3193_v59 }
 0x1c8   : > { %4933 = vst [vmem:[#allocation30_spill] sm:$0xff] %v4275_v60  ;;  %4934 = vst [vmem:[#allocation31_spill] sm:$0xff] %v4277_v38  ;;  %v1352_v57 = vmul.bf16 1061961548, %v1288_v45  ;;  %v1113_v50 = vmul.bf16 %v4270_v5, %v4270_v5  ;;  %v1112_v11 = vmul.bf16 %v4275_v60, %v4275_v60  ;;  %v1114_v6 = vmul.bf16 %v4277_v38, %v4277_v38 }
 0x1c9   : > { %v1287_v52 = vadd.bf16 %v4936_v51, %v3995_v63  ;;  %v1354_v49 = vmul.bf16 1061961548, %v1290_v62  ;;  %v1478_v51 = vadd.bf16 1065369472, %v3195_v19  ;;  %v4292_v16 = vmul.bf16 %v1111_v2, %v4268_v20 }
 0x1ca   : > { %3200 = vtanh.bf16 %v1352_v57  ;;  %v4940_v45 = vmul.bf16 1027030327, %v4939_v41  ;;  %v4297_v43 = vpop.f32.mrb[52].mxu0  ;;  %v4299_v62 = vpop.f32.mrb[52].mxu1  ;;  %v1540_v31 = vmul.bf16 1056980736, %v1476_v47  ;;  %v4306_v2 = vmul.bf16 %v1113_v50, %v4270_v5 }
 0x1cb   : > { %4937 = vst [vmem:[#allocation13_spill] sm:$0xff] %v4292_v16  ;;  %3202 = vtanh.bf16 %v1354_v49  ;;  %v3197_v59 = vpop.eup %3196  ;;  %v1351_v7 = vmul.bf16 1061961548, %v1287_v52  ;;  %v4301_v10 = vpop.f32.mrb[53].mxu0  ;;  %v1542_v57 = vmul.bf16 1056980736, %v1478_v51  ;;  %v4309_v49 = vmul.bf16 %v1112_v11, %v4275_v60 }
 0x1cc   : > { %v1289_v55 = vadd.bf16 %v4940_v45, %v4938_v0  ;;  %v4303_v42 = vpop.f32.mrb[53].mxu1  ;;  %v1475_v19 = vadd.bf16 1065369472, %v3197_v59  ;;  %v1604_v41 = vmul.bf16 %v1540_v31, %v3952_v27  ;;  %v4314_v20 = vmul.bf16 %v1114_v6, %v4277_v38  ;;  %v4319_v50 = vpop.f32.mrb[54].mxu0 }
 0x1cd   : > { %v766_v52 = vadd.f32 %v4181_v61, %v3728_v26  ;;  %v1606_v47 = vmul.bf16 %v1542_v57, %v3954_v30  ;;  %3204 = vtanh.bf16 %v1351_v7  ;;  %v4321_v5 = vpop.f32.mrb[54].mxu1  ;;  %v959_v27 = vadd.f32 %v4183_v37, %v3724_v24  ;;  %v4331_v61 = vpop.f32.mrb[55].mxu0 }
 0x1ce   : > { %v1539_v51 = vmul.bf16 1056980736, %v1475_v19  ;;  %v1353_v59 = vmul.bf16 1061961548, %v1289_v55  ;;  %1982 = vmatprep.mubr.bf16.mxu0 %v1604_v41  ;;  %v768_v31 = vadd.f32 %v4190_v3, %v3730_v29  ;;  %v961_v11 = vadd.f32 %v4192_v46, %v3726_v25  ;;  %v4333_v7 = vpop.f32.mrb[55].mxu1 }
 0x1cf   : > { %v770_v30 = vadd.f32 %v4201_v13, %v3728_v26  ;;  %2143 = vmatprep.mubr.bf16.mxu1 %v1606_v47  ;;  %v963_v37 = vadd.f32 %v4203_v1, %v3724_v24  ;;  %v772_v3 = vadd.f32 %v4210_v32, %v3730_v29  ;;  %v965_v46 = vadd.f32 %v4212_v48, %v3726_v25  ;;  %v4946_v32 = vld [vmem:[#allocation15_spill] sm:$0xff] }
 0x1d0   : > { %v1603_v6 = vmul.bf16 %v1539_v51, %v3948_v12  ;;  %3206 = vtanh.bf16 %v1353_v59  ;;  %v4942_v13 = vmul.bf16 1027030327, %v4079_v21  ;;  %v4943_v12 = vmul.bf16 1027030327, %v4082_v54 }
 0x1d1   : > { %v3199_v55 = vpop.eup %3198  ;;  %v4340_v57 = vpack.c.bf16 %v770_v30, %v766_v52  ;;  %v4350_v1 = vpack.c.bf16 %v963_v37, %v959_v27  ;;  %v4352_v51 = vpack.c.bf16 %v772_v3, %v768_v31  ;;  %v4947_v52 = vmul.bf16 1027030327, %v4073_v17 }
 0x1d2   : > { %v1292_v19 = vadd.bf16 %v4942_v13, %v4058_v22  ;;  %v1294_v41 = vadd.bf16 %v4943_v12, %v4060_v36  ;;  %1983 = vmatmul.mubr.bf16.gmra.mrb[84].mxu0 %v1603_v6  ;;  %v1477_v47 = vadd.bf16 1065369472, %v3199_v55  ;;  %v4357_v30 = vpop.f32.mrb[56].mxu0  ;;  %v4359_v48 = vpop.f32.mrb[56].mxu1  ;;  %v4363_v13 = vpack.c.bf16 %v965_v46, %v961_v11 }
 0x1d3   : > { %4941 = vst [vmem:[#allocation12_spill] sm:$0xff] %v4340_v57  ;;  %4944 = vst [vmem:[#allocation14_spill] sm:$0xff] %v4350_v1  ;;  %v1291_v59 = vadd.bf16 %v4947_v52, %v4946_v32  ;;  %v1115_v21 = vmul.bf16 %v4340_v57, %v4340_v57  ;;  %v4365_v55 = vpop.f32.mrb[57].mxu0  ;;  %v4367_v27 = vpop.f32.mrb[57].mxu1  ;;  %v1117_v17 = vmul.bf16 %v4350_v1, %v4350_v1 }
 0x1d4   : > { %4945 = vst [vmem:[#allocation32_spill] sm:$0xff] %v4352_v51  ;;  %4948 = vst [vmem:[#allocation15_spill] sm:$0xff] %v4363_v13  ;;  %v1356_v54 = vmul.bf16 1061961548, %v1292_v19  ;;  %v1358_v6 = vmul.bf16 1061961548, %v1294_v41  ;;  %v1116_v3 = vmul.bf16 %v4352_v51, %v4352_v51  ;;  %v1118_v41 = vmul.bf16 %v4363_v13, %v4363_v13 }
 0x1d5   : > { %v3201_v31 = vpop.eup %3200  ;;  %v1541_v37 = vmul.bf16 1056980736, %v1477_v47  ;;  %v1355_v12 = vmul.bf16 1061961548, %v1291_v59  ;;  %v4373_v52 = vpop.f32.mrb[58].mxu0  ;;  %v4378_v19 = vmul.bf16 %v1115_v21, %v4340_v57  ;;  %v4391_v21 = vmul.bf16 %v1117_v17, %v4350_v1  ;;  %v4955_v59 = vld [vmem:[#allocation16_spill] sm:$0xff] }
 0x1d6   : > { %4949 = vst [vmem:[#allocation33_spill] sm:$0xff] %v4373_v52  ;;  %v4375_v45 = vpop.f32.mrb[58].mxu1  ;;  %v3203_v11 = vpop.eup %3202  ;;  %v1480_v46 = vadd.bf16 1065369472, %v3201_v31  ;;  %3208 = vtanh.bf16 %v1356_v54 }
 0x1d7   : > { %4950 = vst [vmem:[#allocation34_spill] sm:$0xff] %v4375_v45  ;;  %4951 = vst [vmem:[#allocation35_spill] sm:$0xff] %v4378_v19  ;;  %v4382_v47 = vpop.f32.mrb[59].mxu0  ;;  %v4384_v16 = vpop.f32.mrb[59].mxu1  ;;  %v1605_v38 = vmul.bf16 %v1541_v37, %v3950_v23  ;;  %v1482_v45 = vadd.bf16 1065369472, %v3203_v11  ;;  %3210 = vtanh.bf16 %v1358_v6  ;;  %v4399_v11 = vmul.bf16 %v1118_v41, %v4363_v13 }
 0x1d8   : > { %4952 = vst [vmem:[#allocation36_spill] sm:$0xff] %v4384_v16  ;;  %v1544_v52 = vmul.bf16 1056980736, %v1480_v46  ;;  %4953 = vst [vmem:[#allocation37_spill] sm:$0xff] %v4391_v21  ;;  %v4395_v16 = vmul.bf16 %v1116_v3, %v4352_v51  ;;  %3212 = vtanh.bf16 %v1355_v12  ;;  %v3205_v23 = vpop.eup %3204  ;;  %v4956_v46 = vmul.bf16 1027030327, %v4076_v56 }
 0x1d9   : > { %2144 = vmatmul.mubr.bf16.gmra.mrb[84].mxu1 %v1605_v38  ;;  %v1546_v54 = vmul.bf16 1056980736, %v1482_v45  ;;  %v776_v38 = vadd.f32 %v4234_v15, %v3728_v26  ;;  %v1479_v6 = vadd.bf16 1065369472, %v3205_v23  ;;  %v969_v3 = vadd.f32 %v4236_v18, %v3724_v24 }
 0x1da   : > { %4954 = vst [vmem:[#allocation38_spill] sm:$0xff] %v4395_v16  ;;  %v1608_v37 = vmul.bf16 %v1544_v52, %v4003_v9  ;;  %v1293_v17 = vadd.bf16 %v4956_v46, %v4955_v59  ;;  %v778_v12 = vadd.f32 %v4243_v4, %v3730_v29  ;;  %v4411_v9 = vpop.f32.mrb[60].mxu0  ;;  %v4413_v52 = vpop.f32.mrb[60].mxu1  ;;  %v971_v46 = vadd.f32 %v4245_v40, %v3726_v25 }
 0x1db   : > { %v1610_v45 = vmul.bf16 %v1546_v54, %v4005_v8  ;;  %v3207_v41 = vpop.eup %3206  ;;  %v780_v8 = vadd.f32 %v4252_v44, %v3728_v26  ;;  %v973_v15 = vadd.f32 %v4254_v34, %v3724_v24  ;;  %v4421_v18 = vpop.f32.mrb[61].mxu0  ;;  %v1543_v4 = vmul.bf16 1056980736, %v1479_v6 }
 0x1dc   : > { %1990 = vmatprep.mubr.bf16.mxu0 %v1608_v37  ;;  %v1357_v56 = vmul.bf16 1061961548, %v1293_v17  ;;  %v4423_v54 = vpop.f32.mrb[61].mxu1  ;;  %v1481_v23 = vadd.bf16 1065369472, %v3207_v41  ;;  %v782_v37 = vadd.f32 %v4264_v28, %v3730_v29  ;;  %v975_v17 = vadd.f32 %v4266_v33, %v3726_v25  ;;  %v4429_v40 = vpop.f32.mrb[62].mxu0 }
 0x1dd   : > { %2151 = vmatprep.mubr.bf16.mxu1 %v1610_v45  ;;  %v4431_v57 = vpop.f32.mrb[62].mxu1  ;;  %v4433_v44 = vpack.c.bf16 %v780_v8, %v776_v38  ;;  %v4435_v34 = vpack.c.bf16 %v973_v15, %v969_v3  ;;  %v4957_v45 = vmul.bf16 1027030327, %v4133_v58  ;;  %v4440_v41 = vpop.f32.mrb[63].mxu0  ;;  %v1607_v28 = vmul.bf16 %v1543_v4, %v3995_v63  ;;  %v4960_v8 = vld [vmem:[#allocation19_spill] sm:$0xff]  ;;  %v4961_v58 = vld [vmem:[#allocation22_spill] sm:$0xff] }
 0x1de   : > { %3214 = vtanh.bf16 %v1357_v56  ;;  %4958 = vst [vmem:[#allocation16_spill] sm:$0xff] %v4440_v41  ;;  %v4442_v31 = vpop.f32.mrb[63].mxu1  ;;  %v1545_v33 = vmul.bf16 1056980736, %v1481_v23  ;;  %v4445_v60 = vpack.c.bf16 %v782_v37, %v778_v12  ;;  %v4447_v1 = vpack.c.bf16 %v975_v17, %v971_v46  ;;  %v4963_v46 = vld [vmem:[#allocation17_spill] sm:$0xff]  ;;  %v4964_v4 = vld [vmem:[#allocation20_spill] sm:$0xff] }
 0x1df   : > { %v1296_v6 = vadd.bf16 %v4957_v45, %v4104_v35  ;;  %4959 = vst [vmem:[#allocation39_spill] sm:$0xff] %v4442_v31  ;;  %v1119_v3 = vmul.bf16 %v4433_v44, %v4433_v44  ;;  %v4962_v15 = vmul.bf16 1027030327, %v4961_v58  ;;  %1991 = vmatmul.mubr.bf16.gmra.mrb[88].mxu0 %v1607_v28  ;;  %v1121_v63 = vmul.bf16 %v4435_v34, %v4435_v34 }
 0x1e0   : > { %v1609_v13 = vmul.bf16 %v1545_v33, %v4938_v0  ;;  %v1120_v12 = vmul.bf16 %v4445_v60, %v4445_v60  ;;  %v4965_v23 = vmul.bf16 1027030327, %v4964_v4  ;;  %v1122_v58 = vmul.bf16 %v4447_v1, %v4447_v1  ;;  %v4966_v4 = vld [vmem:[#allocation18_spill] sm:$0xff] }
 0x1e1   : > { %v1360_v56 = vmul.bf16 1061961548, %v1296_v6  ;;  %v1298_v45 = vadd.bf16 %v4962_v15, %v4960_v8  ;;  %v3209_v19 = vpop.eup %3208  ;;  %v1246_v0 = vmul.bf16 1027030327, %v4399_v11  ;;  %v4468_v31 = vmul.bf16 %v1119_v3, %v4433_v44 }
 0x1e2   : > { %v1295_v37 = vadd.bf16 %v4965_v23, %v4963_v46  ;;  %v1484_v6 = vadd.bf16 1065369472, %v3209_v19  ;;  %v3211_v28 = vpop.eup %3210  ;;  %2152 = vmatmul.mubr.bf16.gmra.mrb[88].mxu1 %v1609_v13  ;;  %v4967_v23 = vld [vmem:[#allocation21_spill] sm:$0xff]  ;;  %v4474_v41 = vmul.bf16 %v1121_v63, %v4435_v34  ;;  %v4477_v13 = vmul.bf16 %v1120_v12, %v4445_v60 }
 0x1e3   : > { %3216 = vtanh.bf16 %v1360_v56  ;;  %v1362_v33 = vmul.bf16 1061961548, %v1298_v45  ;;  %v3213_v38 = vpop.eup %3212  ;;  %v1486_v51 = vadd.bf16 1065369472, %v3211_v28  ;;  %v4968_v17 = vmul.bf16 1027030327, %v4967_v23 }
 0x1e4   : > { %v1359_v15 = vmul.bf16 1061961548, %v1295_v37  ;;  %v1548_v21 = vmul.bf16 1056980736, %v1484_v6  ;;  %v1483_v16 = vadd.bf16 1065369472, %v3213_v38  ;;  %v4481_v37 = vmul.bf16 %v1122_v58, %v4447_v1 }
 0x1e5   : > { %v1297_v19 = vadd.bf16 %v4968_v17, %v4966_v4  ;;  %3218 = vtanh.bf16 %v1362_v33  ;;  %v1550_v45 = vmul.bf16 1056980736, %v1486_v51  ;;  %v786_v17 = vadd.f32 %v4297_v43, %v3728_v26  ;;  %v4973_v23 = vld [vmem:[#allocation25_spill] sm:$0xff] }
 0x1e6   : > { %v1612_v56 = vmul.bf16 %v1548_v21, %v4058_v22  ;;  %3220 = vtanh.bf16 %v1359_v15  ;;  %v1547_v3 = vmul.bf16 1056980736, %v1483_v16  ;;  %v979_v38 = vadd.f32 %v4299_v62, %v3724_v24  ;;  %v4972_v15 = vld [vmem:[#allocation23_spill] sm:$0xff] }
 0x1e7   : > { %v1361_v6 = vmul.bf16 1061961548, %v1297_v19  ;;  %v1614_v63 = vmul.bf16 %v1550_v45, %v4060_v36  ;;  %v788_v12 = vadd.f32 %v4301_v10, %v3730_v29  ;;  %v981_v22 = vadd.f32 %v4303_v42, %v3726_v25 }
 0x1e8   : > { %1998 = vmatprep.mubr.bf16.mxu0 %v1612_v56  ;;  %v790_v51 = vadd.f32 %v4319_v50, %v3728_v26  ;;  %v1611_v21 = vmul.bf16 %v1547_v3, %v4946_v32  ;;  %v983_v43 = vadd.f32 %v4321_v5, %v3724_v24  ;;  %v792_v62 = vadd.f32 %v4331_v61, %v3730_v29  ;;  %v4970_v5 = vld [vmem:[#allocation27_spill] sm:$0xff] }
 0x1e9   : > { %v3215_v16 = vpop.eup %3214  ;;  %3222 = vtanh.bf16 %v1361_v6  ;;  %2159 = vmatprep.mubr.bf16.mxu1 %v1614_v63  ;;  %v985_v42 = vadd.f32 %v4333_v7, %v3726_v25  ;;  %v4969_v10 = vmul.bf16 1027030327, %v4218_v39  ;;  %v4971_v33 = vmul.bf16 1027030327, %v4970_v5 }
 0x1ea   : > { %v1485_v36 = vadd.bf16 1065369472, %v3215_v16  ;;  %v4499_v58 = vpack.c.bf16 %v790_v51, %v786_v17  ;;  %1999 = vmatmul.mubr.bf16.gmra.mrb[92].mxu0 %v1611_v21  ;;  %v4506_v32 = vpack.c.bf16 %v983_v43, %v979_v38  ;;  %v4508_v28 = vpack.c.bf16 %v792_v62, %v788_v12 }
 0x1eb   : > { %v1300_v50 = vadd.bf16 %v4969_v10, %v4176_v53  ;;  %v1302_v61 = vadd.bf16 %v4971_v33, %v4188_v14  ;;  %v4974_v19 = vmul.bf16 1027030327, %v4973_v23  ;;  %v4518_v3 = vpack.c.bf16 %v985_v42, %v981_v22  ;;  %v4976_v42 = vld [vmem:[#allocation26_spill] sm:$0xff] }
 0x1ec   : > { %v1549_v45 = vmul.bf16 1056980736, %v1485_v36  ;;  %v1123_v7 = vmul.bf16 %v4499_v58, %v4499_v58  ;;  %v1125_v17 = vmul.bf16 %v4506_v32, %v4506_v32  ;;  %v1124_v38 = vmul.bf16 %v4508_v28, %v4508_v28  ;;  %v4975_v36 = vld [vmem:[#allocation24_spill] sm:$0xff] }
 0x1ed   : > { %v1299_v56 = vadd.bf16 %v4974_v19, %v4972_v15  ;;  %v1364_v39 = vmul.bf16 1061961548, %v1300_v50  ;;  %v1366_v63 = vmul.bf16 1061961548, %v1302_v61  ;;  %v1247_v16 = vmul.bf16 1027030327, %v4468_v31 }
 0x1ee   : > { %v3217_v6 = vpop.eup %3216  ;;  %v1613_v51 = vmul.bf16 %v1549_v45, %v4955_v59  ;;  %v1126_v43 = vmul.bf16 %v4518_v3, %v4518_v3  ;;  %v1249_v22 = vmul.bf16 1027030327, %v4474_v41  ;;  %v1248_v62 = vmul.bf16 1027030327, %v4477_v13 }
 0x1ef   : > { %v1363_v12 = vmul.bf16 1061961548, %v1299_v56  ;;  %v1488_v21 = vadd.bf16 1065369472, %v3217_v6  ;;  %3224 = vtanh.bf16 %v1364_v39  ;;  %v4977_v10 = vmul.bf16 1027030327, %v4976_v42 }
 0x1f0   : > { %v3219_v5 = vpop.eup %3218  ;;  %2160 = vmatmul.mubr.bf16.gmra.mrb[92].mxu1 %v1613_v51  ;;  %v1250_v33 = vmul.bf16 1027030327, %v4481_v37  ;;  %v4535_v61 = vmul.bf16 %v1123_v7, %v4499_v58  ;;  %3226 = vtanh.bf16 %v1366_v63  ;;  %v4538_v56 = vmul.bf16 %v1125_v17, %v4506_v32 }
 0x1f1   : > { %v1301_v50 = vadd.bf16 %v4977_v10, %v4975_v36  ;;  %v1552_v59 = vmul.bf16 1056980736, %v1488_v21  ;;  %v3221_v23 = vpop.eup %3220  ;;  %v1490_v19 = vadd.bf16 1065369472, %v3219_v5  ;;  %v4541_v45 = vmul.bf16 %v1124_v38, %v4508_v28 }
 0x1f2   : > { %3228 = vtanh.bf16 %v1363_v12  ;;  %v1487_v6 = vadd.bf16 1065369472, %v3221_v23  ;;  %v4545_v51 = vmul.bf16 %v1126_v43, %v4518_v3  ;;  %v796_v7 = vadd.f32 %v4357_v30, %v3728_v26  ;;  %v4978_v43 = vld [vmem:[#allocation33_spill] sm:$0xff]  ;;  %v4979_v30 = vld [vmem:[#allocation34_spill] sm:$0xff] }
 0x1f3   : > { %v1616_v39 = vmul.bf16 %v1552_v59, %v4104_v35  ;;  %v1365_v21 = vmul.bf16 1061961548, %v1301_v50  ;;  %v1554_v42 = vmul.bf16 1056980736, %v1490_v19  ;;  %v989_v63 = vadd.f32 %v4359_v48, %v3724_v24  ;;  %v4980_v19 = vld [vmem:[#allocation36_spill] sm:$0xff] }
 0x1f4   : > { %v798_v17 = vadd.f32 %v4365_v55, %v3730_v29  ;;  %v3223_v38 = vpop.eup %3222  ;;  %v1551_v12 = vmul.bf16 1056980736, %v1487_v6  ;;  %v991_v35 = vadd.f32 %v4367_v27, %v3726_v25  ;;  %v800_v10 = vadd.f32 %v4978_v43, %v3728_v26  ;;  %v4981_v27 = vld [vmem:[#allocation30_spill] sm:$0xff]  ;;  %v4983_v43 = vld [vmem:[#allocation31_spill] sm:$0xff] }
 0x1f5   : > { %2006 = vmatprep.mubr.bf16.mxu0 %v1616_v39  ;;  %3230 = vtanh.bf16 %v1365_v21  ;;  %v1618_v50 = vmul.bf16 %v1554_v42, %v4960_v8  ;;  %v1489_v5 = vadd.bf16 1065369472, %v3223_v38  ;;  %v993_v59 = vadd.f32 %v4979_v30, %v3724_v24 }
 0x1f6   : > { %v802_v48 = vadd.f32 %v4382_v47, %v3730_v29  ;;  %v1615_v55 = vmul.bf16 %v1551_v12, %v4963_v46  ;;  %v4563_v23 = vpack.c.bf16 %v800_v10, %v796_v7  ;;  %v995_v39 = vadd.f32 %v4980_v19, %v3726_v25  ;;  %v4985_v10 = vld [vmem:[#allocation28_spill] sm:$0xff] }
 0x1f7   : > { %v4982_v6 = vmul.bf16 1027030327, %v4309_v49  ;;  %2167 = vmatprep.mubr.bf16.mxu1 %v1618_v50  ;;  %v1553_v8 = vmul.bf16 1056980736, %v1489_v5  ;;  %v4570_v42 = vpack.c.bf16 %v993_v59, %v989_v63  ;;  %v4984_v47 = vmul.bf16 1027030327, %v4314_v20 }
 0x1f8   : > { %v4572_v38 = vpack.c.bf16 %v802_v48, %v798_v17  ;;  %2007 = vmatmul.mubr.bf16.gmra.mrb[96].mxu0 %v1615_v55  ;;  %v1127_v46 = vmul.bf16 %v4563_v23, %v4563_v23  ;;  %v4579_v7 = vpack.c.bf16 %v995_v39, %v991_v35  ;;  %v4986_v49 = vld [vmem:[#allocation13_spill] sm:$0xff]  ;;  %v5002_v13 = vmul.bf16 1027030327, %v4541_v45 }
 0x1f9   : > { %v1304_v21 = vadd.bf16 %v4982_v6, %v4981_v27  ;;  %v1306_v30 = vadd.bf16 %v4984_v47, %v4983_v43  ;;  %v4987_v19 = vmul.bf16 1027030327, %v4986_v49  ;;  %v1617_v63 = vmul.bf16 %v1553_v8, %v4966_v4 }
 0x1fa   : > { %v1129_v5 = vmul.bf16 %v4570_v42, %v4570_v42  ;;  %v3225_v59 = vpop.eup %3224  ;;  %v1128_v48 = vmul.bf16 %v4572_v38, %v4572_v38  ;;  %v1130_v35 = vmul.bf16 %v4579_v7, %v4579_v7  ;;  %v1254_v47 = vmul.bf16 1027030327, %v4545_v51 }
 0x1fb   : > { %v1368_v12 = vmul.bf16 1061961548, %v1304_v21  ;;  %v1303_v50 = vadd.bf16 %v4987_v19, %v4985_v10  ;;  %v1370_v20 = vmul.bf16 1061961548, %v1306_v30  ;;  %v3227_v39 = vpop.eup %3226  ;;  %2168 = vmatmul.mubr.bf16.gmra.mrb[96].mxu1 %v1617_v63  ;;  %v1492_v21 = vadd.bf16 1065369472, %v3225_v59 }
 0x1fc   : > { %v1494_v30 = vadd.bf16 1065369472, %v3227_v39  ;;  %v4596_v49 = vmul.bf16 %v1127_v46, %v4563_v23  ;;  %v4989_v63 = vmul.bf16 1027030327, %v4306_v2  ;;  %v4608_v59 = vmul.bf16 %v1130_v35, %v4579_v7 }
 0x1fd   : > { %3232 = vtanh.bf16 %v1368_v12  ;;  %v1367_v55 = vmul.bf16 1061961548, %v1303_v50  ;;  %v3229_v8 = vpop.eup %3228  ;;  %v1556_v19 = vmul.bf16 1056980736, %v1492_v21  ;;  %v4599_v12 = vmul.bf16 %v1129_v5, %v4570_v42  ;;  %v4988_v50 = vld [vmem:[#allocation29_spill] sm:$0xff] }
 0x1fe   : > { %3234 = vtanh.bf16 %v1370_v20  ;;  %v1491_v17 = vadd.bf16 1065369472, %v3229_v8  ;;  %v1305_v6 = vadd.bf16 %v4989_v63, %v4988_v50  ;;  %v1558_v4 = vmul.bf16 1056980736, %v1494_v30 }
 0x1ff   : > { %3236 = vtanh.bf16 %v1367_v55  ;;  %v4605_v20 = vmul.bf16 %v1128_v48, %v4572_v38  ;;  %v806_v46 = vadd.f32 %v4411_v9, %v3728_v26  ;;  %v1620_v39 = vmul.bf16 %v1556_v19, %v4176_v53  ;;  %v4992_v19 = vld [vmem:[#allocation32_spill] sm:$0xff] }
 0x200   : > { %v3231_v55 = vpop.eup %3230  ;;  %v1555_v21 = vmul.bf16 1056980736, %v1491_v17  ;;  %v1369_v5 = vmul.bf16 1061961548, %v1305_v6  ;;  %v999_v8 = vadd.f32 %v4413_v52, %v3724_v24  ;;  %v1622_v2 = vmul.bf16 %v1558_v4, %v4188_v14  ;;  %v4990_v14 = vld [vmem:[#allocation16_spill] sm:$0xff] }
 0x201   : > { %v1493_v30 = vadd.bf16 1065369472, %v3231_v55  ;;  %v808_v48 = vadd.f32 %v4421_v18, %v3730_v29  ;;  %v1001_v35 = vadd.f32 %v4423_v54, %v3726_v25  ;;  %2014 = vmatprep.mubr.bf16.mxu0 %v1620_v39  ;;  %v810_v53 = vadd.f32 %v4429_v40, %v3728_v26  ;;  %v4991_v18 = vld [vmem:[#allocation39_spill] sm:$0xff]  ;;  %v4993_v54 = vld [vmem:[#allocation38_spill] sm:$0xff] }
 0x202   : > { %v1619_v9 = vmul.bf16 %v1555_v21, %v4972_v15  ;;  %3238 = vtanh.bf16 %v1369_v5  ;;  %v1003_v17 = vadd.f32 %v4431_v57, %v3724_v24  ;;  %2175 = vmatprep.mubr.bf16.mxu1 %v1622_v2  ;;  %v812_v6 = vadd.f32 %v4990_v14, %v3730_v29  ;;  %v4995_v26 = vld [vmem:[#allocation15_spill] sm:$0xff]  ;;  %v4996_v57 = vld [vmem:[#allocation12_spill] sm:$0xff] }
 0x203   : > { %v1557_v52 = vmul.bf16 1056980736, %v1493_v30  ;;  %v1005_v4 = vadd.f32 %v4991_v18, %v3726_v25  ;;  %v4994_v63 = vmul.bf16 1027030327, %v4993_v54  ;;  %v4632_v15 = vpack.c.bf16 %v810_v53, %v806_v46  ;;  %v4997_v40 = vld [vmem:[#allocation35_spill] sm:$0xff] }
 0x204   : > { %2015 = vmatmul.mubr.bf16.gmra.mrb[100].mxu0 %v1619_v9  ;;  %v4634_v39 = vpack.c.bf16 %v1003_v17, %v999_v8  ;;  %v1310_v24 = vadd.bf16 %v1246_v0, %v4995_v26  ;;  %v4998_v21 = vmul.bf16 1027030327, %v4997_v40  ;;  %v4643_v25 = vpack.c.bf16 %v812_v6, %v808_v48 }
 0x205   : > { %v1308_v55 = vadd.bf16 %v4994_v63, %v4992_v19  ;;  %v1621_v5 = vmul.bf16 %v1557_v52, %v4975_v36  ;;  %v4645_v2 = vpack.c.bf16 %v1005_v4, %v1001_v35  ;;  %v1255_v46 = vmul.bf16 1027030327, %v4596_v49 }
 0x206   : > { %v1307_v29 = vadd.bf16 %v4998_v21, %v4996_v57  ;;  %v1374_v8 = vmul.bf16 1061961548, %v1310_v24  ;;  %v1131_v0 = vmul.bf16 %v4632_v15, %v4632_v15  ;;  %v1132_v14 = vmul.bf16 %v4643_v25, %v4643_v25 }
 0x207   : > { %v1372_v30 = vmul.bf16 1061961548, %v1308_v55  ;;  %2176 = vmatmul.mubr.bf16.gmra.mrb[100].mxu1 %v1621_v5  ;;  %v1257_v48 = vmul.bf16 1027030327, %v4599_v12  ;;  %v1256_v35 = vmul.bf16 1027030327, %v4605_v20  ;;  %v1133_v63 = vmul.bf16 %v4634_v39, %v4634_v39 }
 0x208   : > { %v3233_v9 = vpop.eup %3232  ;;  %v1371_v53 = vmul.bf16 1061961548, %v1307_v29  ;;  %v1258_v6 = vmul.bf16 1027030327, %v4608_v59  ;;  %v1134_v55 = vmul.bf16 %v4645_v2, %v4645_v2  ;;  %v4661_v21 = vmul.bf16 %v1131_v0, %v4632_v15  ;;  %v4999_v29 = vld [vmem:[#allocation14_spill] sm:$0xff]  ;;  %v5000_v5 = vld [vmem:[#allocation37_spill] sm:$0xff] }
 0x209   : > { %v3235_v17 = vpop.eup %3234  ;;  %v1496_v11 = vadd.bf16 1065369472, %v3233_v9  ;;  %3240 = vtanh.bf16 %v1372_v30  ;;  %v1196_v20 = vmul.bf16 %v1132_v14, %v4643_v25  ;;  %v5001_v30 = vmul.bf16 1027030327, %v5000_v5 }
 0x20a   : > { %v3237_v36 = vpop.eup %3236  ;;  %v1498_v52 = vadd.bf16 1065369472, %v3235_v17  ;;  %3242 = vtanh.bf16 %v1374_v8  ;;  %v1312_v8 = vadd.bf16 %v1248_v62, %v4445_v60  ;;  %v1316_v62 = vadd.bf16 %v5002_v13, %v4508_v28 }
 0x20b   : > { %v1560_v18 = vmul.bf16 1056980736, %v1496_v11  ;;  %v1495_v4 = vadd.bf16 1065369472, %v3237_v36  ;;  %3244 = vtanh.bf16 %v1371_v53  ;;  %v1309_v9 = vadd.bf16 %v5001_v30, %v4999_v29 }
 0x20c   : > { %v1562_v54 = vmul.bf16 1056980736, %v1498_v52  ;;  %v1313_v11 = vadd.bf16 %v1249_v22, %v4435_v34  ;;  %v1198_v31 = vmul.bf16 %v1134_v55, %v4645_v2  ;;  %v5003_v41 = vmul.bf16 1027030327, %v4535_v61 }
 0x20d   : > { %v1624_v24 = vmul.bf16 %v1560_v18, %v4981_v27  ;;  %v1559_v40 = vmul.bf16 1056980736, %v1495_v4  ;;  %v1314_v27 = vadd.bf16 %v1250_v33, %v4447_v1  ;;  %v3239_v53 = vpop.eup %3238  ;;  %v1373_v37 = vmul.bf16 1061961548, %v1309_v9 }
 0x20e   : > { %v1626_v59 = vmul.bf16 %v1562_v54, %v4983_v43  ;;  %v1311_v43 = vadd.bf16 %v1247_v16, %v4433_v44  ;;  %v1497_v0 = vadd.bf16 1065369472, %v3239_v53  ;;  %v1376_v33 = vmul.bf16 1061961548, %v1312_v8 }
 0x20f   : > { %2022 = vmatprep.mubr.bf16.mxu0 %v1624_v24  ;;  %v1623_v17 = vmul.bf16 %v1559_v40, %v4985_v10  ;;  %v1318_v10 = vadd.bf16 %v1254_v47, %v4518_v3  ;;  %v1378_v16 = vmul.bf16 1061961548, %v1314_v27  ;;  %v1315_v22 = vadd.bf16 %v5003_v41, %v4499_v58 }
 0x210   : > { %2183 = vmatprep.mubr.bf16.mxu1 %v1626_v59  ;;  %v1375_v14 = vmul.bf16 1061961548, %v1311_v43  ;;  %v1561_v36 = vmul.bf16 1056980736, %v1497_v0  ;;  %v1260_v45 = vmul.bf16 1027030327, %v1196_v20  ;;  %3246 = vtanh.bf16 %v1373_v37 }
 0x211   : > { %2023 = vmatmul.mubr.bf16.gmra.mrb[104].mxu0 %v1623_v17  ;;  %v1377_v52 = vmul.bf16 1061961548, %v1313_v11  ;;  %3248 = vtanh.bf16 %v1376_v33  ;;  %v1380_v18 = vmul.bf16 1061961548, %v1316_v62  ;;  %v5004_v4 = vmul.bf16 1027030327, %v4538_v56 }
 0x212   : > { %v1320_v47 = vadd.bf16 %v1256_v35, %v4572_v38  ;;  %v1625_v55 = vmul.bf16 %v1561_v36, %v4988_v50  ;;  %3250 = vtanh.bf16 %v1378_v16  ;;  %v1382_v24 = vmul.bf16 1061961548, %v1318_v10 }
 0x213   : > { %v1317_v51 = vadd.bf16 %v5004_v4, %v4506_v32  ;;  %v1322_v61 = vadd.bf16 %v1258_v6, %v4579_v7  ;;  %v1262_v59 = vmul.bf16 1027030327, %v1198_v31  ;;  %3252 = vtanh.bf16 %v1375_v14 }
 0x214   : > { %v3241_v54 = vpop.eup %3240  ;;  %v1379_v5 = vmul.bf16 1061961548, %v1315_v22  ;;  %2184 = vmatmul.mubr.bf16.gmra.mrb[104].mxu1 %v1625_v55  ;;  %3254 = vtanh.bf16 %v1377_v52  ;;  %v1319_v56 = vadd.bf16 %v1255_v46, %v4563_v23  ;;  %v1384_v50 = vmul.bf16 1061961548, %v1320_v47 }
 0x215   : > { %v3243_v40 = vpop.eup %3242  ;;  %v1500_v20 = vadd.bf16 1065369472, %v3241_v54  ;;  %v1381_v9 = vmul.bf16 1061961548, %v1317_v51  ;;  %3256 = vtanh.bf16 %v1380_v18  ;;  %v1324_v27 = vadd.bf16 %v1260_v45, %v4643_v25 }
 0x216   : > { %v1502_v30 = vadd.bf16 1065369472, %v3243_v40  ;;  %v3245_v35 = vpop.eup %3244  ;;  %3258 = vtanh.bf16 %v1382_v24  ;;  %v1386_v17 = vmul.bf16 1061961548, %v1322_v61  ;;  %v1259_v43 = vmul.bf16 1027030327, %v4661_v21 }
 0x217   : > { %v1564_v8 = vmul.bf16 1056980736, %v1500_v20  ;;  %v1499_v53 = vadd.bf16 1065369472, %v3245_v35  ;;  %3260 = vtanh.bf16 %v1379_v5  ;;  %v1383_v49 = vmul.bf16 1061961548, %v1319_v56 }
 0x218   : > { %v1566_v6 = vmul.bf16 1056980736, %v1502_v30  ;;  %3262 = vtanh.bf16 %v1381_v9  ;;  %v1197_v46 = vmul.bf16 %v1133_v63, %v4634_v39  ;;  %v1388_v0 = vmul.bf16 1061961548, %v1324_v27 }
 0x219   : > { %v1628_v11 = vmul.bf16 %v1564_v8, %v4992_v19  ;;  %v1563_v62 = vmul.bf16 1056980736, %v1499_v53  ;;  %3264 = vtanh.bf16 %v1384_v50  ;;  %v1326_v37 = vadd.bf16 %v1262_v59, %v4645_v2 }
 0x21a   : > { %v1630_v13 = vmul.bf16 %v1566_v6, %v4995_v26  ;;  %3266 = vtanh.bf16 %v1386_v17  ;;  %v1321_v19 = vadd.bf16 %v1257_v48, %v4570_v42  ;;  %v1323_v63 = vadd.bf16 %v1259_v43, %v4632_v15 }
 0x21b   : > { %2030 = vmatprep.mubr.bf16.mxu0 %v1628_v11  ;;  %v1627_v21 = vmul.bf16 %v1563_v62, %v4996_v57  ;;  %v3247_v26 = vpop.eup %3246  ;;  %3268 = vtanh.bf16 %v1383_v49  ;;  %v1261_v16 = vmul.bf16 1027030327, %v1197_v46  ;;  %v1390_v41 = vmul.bf16 1061961548, %v1326_v37 }
 0x21c   : > { %2191 = vmatprep.mubr.bf16.mxu1 %v1630_v13  ;;  %v3249_v33 = vpop.eup %3248  ;;  %v1501_v10 = vadd.bf16 1065369472, %v3247_v26  ;;  %3270 = vtanh.bf16 %v1388_v0  ;;  %v1385_v45 = vmul.bf16 1061961548, %v1321_v19  ;;  %v1387_v54 = vmul.bf16 1061961548, %v1323_v63 }
 0x21d   : > { %2031 = vmatmul.mubr.bf16.gmra.mrb[108].mxu0 %v1627_v21  ;;  %v3251_v31 = vpop.eup %3250  ;;  %v1504_v14 = vadd.bf16 1065369472, %v3249_v33  ;;  %3272 = vtanh.bf16 %v1390_v41  ;;  %v1325_v30 = vadd.bf16 %v1261_v16, %v4634_v39 }
 0x21e   : > { %v3253_v22 = vpop.eup %3252  ;;  %v1565_v36 = vmul.bf16 1056980736, %v1501_v10  ;;  %v1506_v57 = vadd.bf16 1065369472, %v3251_v31  ;;  %3274 = vtanh.bf16 %v1385_v45 }
 0x21f   : > { %v3255_v52 = vpop.eup %3254  ;;  %v1568_v18 = vmul.bf16 1056980736, %v1504_v14  ;;  %v1503_v12 = vadd.bf16 1065369472, %v3253_v22  ;;  %3276 = vtanh.bf16 %v1387_v54 }
 0x220   : > { %v3257_v48 = vpop.eup %3256  ;;  %v1629_v4 = vmul.bf16 %v1565_v36, %v4999_v29  ;;  %v1570_v51 = vmul.bf16 1056980736, %v1506_v57  ;;  %v1505_v47 = vadd.bf16 1065369472, %v3255_v52 }
 0x221   : > { %v3259_v55 = vpop.eup %3258  ;;  %v1632_v24 = vmul.bf16 %v1568_v18, %v4445_v60  ;;  %v1567_v61 = vmul.bf16 1056980736, %v1503_v12  ;;  %v1508_v40 = vadd.bf16 1065369472, %v3257_v48 }
 0x222   : > { %v3261_v59 = vpop.eup %3260  ;;  %2192 = vmatmul.mubr.bf16.gmra.mrb[108].mxu1 %v1629_v4  ;;  %v1634_v20 = vmul.bf16 %v1570_v51, %v4447_v1  ;;  %v1510_v5 = vadd.bf16 1065369472, %v3259_v55  ;;  %v1569_v60 = vmul.bf16 1056980736, %v1505_v47  ;;  %v1389_v1 = vmul.bf16 1061961548, %v1325_v30 }
 0x223   : > { %v3263_v9 = vpop.eup %3262  ;;  %2038 = vmatprep.mubr.bf16.mxu0 %v1632_v24  ;;  %v1631_v29 = vmul.bf16 %v1567_v61, %v4433_v44  ;;  %v1572_v56 = vmul.bf16 1056980736, %v1508_v40  ;;  %v1507_v35 = vadd.bf16 1065369472, %v3261_v59  ;;  %v4735_v51 = vld [vmem:[%s4844_s4] ss:$0 sm:$0xff] }
 0x224   : > { %v3265_v8 = vpop.eup %3264  ;;  %2199 = vmatprep.mubr.bf16.mxu1 %v1634_v20  ;;  %v1574_v50 = vmul.bf16 1056980736, %v1510_v5  ;;  %v1633_v49 = vmul.bf16 %v1569_v60, %v4435_v34  ;;  %v1509_v46 = vadd.bf16 1065369472, %v3263_v9  ;;  %3278 = vtanh.bf16 %v1389_v1 }
 0x225   : > { %v3267_v27 = vpop.eup %3266  ;;  %2039 = vmatmul.mubr.bf16.gmra.mrb[112].mxu0 %v1631_v29  ;;  %v1636_v6 = vmul.bf16 %v1572_v56, %v4508_v28  ;;  %v1512_v53 = vadd.bf16 1065369472, %v3265_v8  ;;  %v1571_v11 = vmul.bf16 1056980736, %v1507_v35 }
 0x226   : > { %v3269_v17 = vpop.eup %3268  ;;  %v1638_v43 = vmul.bf16 %v1574_v50, %v4518_v3  ;;  %v1514_v44 = vadd.bf16 1065369472, %v3267_v27  ;;  %v1573_v33 = vmul.bf16 1056980736, %v1509_v46 }
 0x227   : > { %2046 = vmatprep.mubr.bf16.mxu0 %v1636_v6  ;;  %v1576_v13 = vmul.bf16 1056980736, %v1512_v53  ;;  %v3271_v62 = vpop.eup %3270  ;;  %v1635_v28 = vmul.bf16 %v1571_v11, %v4499_v58  ;;  %v1511_v19 = vadd.bf16 1065369472, %v3269_v17 }
 0x228   : > { %v1516_v37 = vadd.bf16 1065369472, %v3271_v62  ;;  %v1578_v21 = vmul.bf16 1056980736, %v1514_v44  ;;  %v3273_v26 = vpop.eup %3272 }
 0x229   : > { %v1640_v0 = vmul.bf16 %v1576_v13, %v4572_v38  ;;  %v3275_v3 = vpop.eup %3274  ;;  %v1575_v34 = vmul.bf16 1056980736, %v1511_v19  ;;  %v1518_v31 = vadd.bf16 1065369472, %v3273_v26  ;;  %v1637_v38 = vmul.bf16 %v1573_v33, %v4506_v32 }
 0x22a   : > { %2200 = vmatmul.mubr.bf16.gmra.mrb[112].mxu1 %v1633_v49  ;;  %v1580_v10 = vmul.bf16 1056980736, %v1516_v37  ;;  %v1642_v63 = vmul.bf16 %v1578_v21, %v4579_v7  ;;  %v3277_v16 = vpop.eup %3276  ;;  %v1513_v14 = vadd.bf16 1065369472, %v3275_v3 }
 0x22b   : > { %2207 = vmatprep.mubr.bf16.mxu1 %v1638_v43  ;;  %v1639_v58 = vmul.bf16 %v1575_v34, %v4563_v23  ;;  %v1582_v22 = vmul.bf16 1056980736, %v1518_v31  ;;  %v1515_v36 = vadd.bf16 1065369472, %v3277_v16 }
 0x22c   : > { %v1644_v41 = vmul.bf16 %v1580_v10, %v4643_v25  ;;  %v1577_v57 = vmul.bf16 1056980736, %v1513_v14 }
 0x22d   : > { %2047 = vmatmul.mubr.bf16.gmra.mrb[116].mxu0 %v1635_v28  ;;  %v1646_v7 = vmul.bf16 %v1582_v22, %v4645_v2  ;;  %v1579_v52 = vmul.bf16 1056980736, %v1515_v36 }
 0x22e   : > { %2054 = vmatprep.mubr.bf16.mxu0 %v1640_v0  ;;  %v1641_v18 = vmul.bf16 %v1577_v57, %v4570_v42 }
 0x22f   : > { %v3279_v45 = vpop.eup %3278  ;;  %v1643_v32 = vmul.bf16 %v1579_v52, %v4632_v15 }
 0x230   : > { %v1517_v12 = vadd.bf16 1065369472, %v3279_v45 }
 0x232   : > { %2208 = vmatmul.mubr.bf16.gmra.mrb[116].mxu1 %v1637_v38  ;;  %v1581_v25 = vmul.bf16 1056980736, %v1517_v12 }
 0x233   : > { %2215 = vmatprep.mubr.bf16.mxu1 %v1642_v63 }
 0x234   : > { %v1645_v23 = vmul.bf16 %v1581_v25, %v4634_v39 }
 0x235   : > { %2055 = vmatmul.mubr.bf16.gmra.mrb[120].mxu0 %v1639_v58 }
 0x236   : > { %2062 = vmatprep.mubr.bf16.mxu0 %v1644_v41 }
 0x23a   : > { %2216 = vmatmul.mubr.bf16.gmra.mrb[120].mxu1 %v1641_v18 }
 0x23b   : > { %2223 = vmatprep.mubr.bf16.mxu1 %v1646_v7 }
 0x23d   : > { %2063 = vmatmul.mubr.bf16.gmra.mrb[124].mxu0 %v1643_v32 }
 0x242   : > { %2224 = vmatmul.mubr.bf16.gmra.mrb[124].mxu1 %v1645_v23 }
 0x260   : > { %v2774_v48 = vpop.f32.mrb[64].mxu0 }
 0x261   : > { %v2886_v4 = vpop.f32.mrb[64].mxu1  ;;  %v2775_v2 = vpop.f32.mrb[65].mxu0 }
 0x262   : > { %v2776_v42 = vadd.f32 %v2775_v2, %v2774_v48  ;;  %v2887_v47 = vpop.f32.mrb[65].mxu1  ;;  %v2777_v54 = vpop.f32.mrb[66].mxu0 }
 0x263   : > { %v2888_v55 = vadd.f32 %v2887_v47, %v2886_v4  ;;  %v2889_v24 = vpop.f32.mrb[66].mxu1  ;;  %v2778_v15 = vpop.f32.mrb[67].mxu0 }
 0x264   : > { %v1945_v61 = vadd.f32 %v2776_v42, %v4735_v51  ;;  %v2779_v40 = vadd.f32 %v2778_v15, %v2777_v54  ;;  %v2890_v39 = vpop.f32.mrb[67].mxu1 }
 0x265   : > { %v2891_v59 = vadd.f32 %v2890_v39, %v2889_v24 }
 0x266   : > { %v2106_v20 = vadd.f32 %v2888_v55, %v1945_v61  ;;  %v1948_v5 = vadd.f32 %v2779_v40, %v4735_v51 }
 0x268   : > { %v2109_v30 = vadd.f32 %v2891_v59, %v1948_v5 }
 0x26a   : > { %v2666_v9 = vpack.c.bf16 %v2109_v30, %v2106_v20 }
 0x26c   : > { %2667 = vst [vmem:[%s4741_s10] sm:$0xff] %v2666_v9  }
 0x26f   : > { %v2780_v29 = vpop.f32.mrb[68].mxu0 }
 0x270   : > { %v2781_v56 = vpop.f32.mrb[69].mxu0 }
 0x271   : > { %v2782_v35 = vadd.f32 %v2781_v56, %v2780_v29  ;;  %v2783_v8 = vpop.f32.mrb[70].mxu0 }
 0x272   : > { %v2784_v60 = vpop.f32.mrb[71].mxu0 }
 0x273   : > { %v2785_v50 = vadd.f32 %v2784_v60, %v2783_v8  ;;  %v2892_v27 = vpop.f32.mrb[68].mxu1  ;;  %v1953_v6 = vadd.f32 %v2782_v35, %v4735_v51 }
 0x274   : > { %v2893_v53 = vpop.f32.mrb[69].mxu1 }
 0x275   : > { %v2894_v1 = vadd.f32 %v2893_v53, %v2892_v27  ;;  %v2895_v17 = vpop.f32.mrb[70].mxu1  ;;  %v1956_v43 = vadd.f32 %v2785_v50, %v4735_v51 }
 0x276   : > { %v2896_v11 = vpop.f32.mrb[71].mxu1 }
 0x277   : > { %v2114_v13 = vadd.f32 %v2894_v1, %v1953_v6  ;;  %v2897_v44 = vadd.f32 %v2896_v11, %v2895_v17 }
 0x279   : > { %v2117_v62 = vadd.f32 %v2897_v44, %v1956_v43 }
 0x27b   : > { %v2671_v49 = vpack.c.bf16 %v2117_v62, %v2114_v13 }
 0x27d   : > { %2743 = vst [vmem:[%s4741_s10 + $0x8] sm:$0xff] %v2671_v49  }
 0x280   : > { %v2786_v46 = vpop.f32.mrb[72].mxu0 }
 0x281   : > { %v2787_v0 = vpop.f32.mrb[73].mxu0 }
 0x282   : > { %v2788_v28 = vadd.f32 %v2787_v0, %v2786_v46  ;;  %v2789_v21 = vpop.f32.mrb[74].mxu0 }
 0x283   : > { %v2898_v37 = vpop.f32.mrb[72].mxu1  ;;  %v2790_v26 = vpop.f32.mrb[75].mxu0 }
 0x284   : > { %v2899_v19 = vpop.f32.mrb[73].mxu1  ;;  %v1961_v33 = vadd.f32 %v2788_v28, %v4735_v51  ;;  %v2791_v63 = vadd.f32 %v2790_v26, %v2789_v21 }
 0x285   : > { %v2900_v3 = vadd.f32 %v2899_v19, %v2898_v37  ;;  %v2901_v10 = vpop.f32.mrb[74].mxu1 }
 0x286   : > { %v2902_v34 = vpop.f32.mrb[75].mxu1  ;;  %v1964_v16 = vadd.f32 %v2791_v63, %v4735_v51 }
 0x287   : > { %v2122_v31 = vadd.f32 %v2900_v3, %v1961_v33  ;;  %v2903_v38 = vadd.f32 %v2902_v34, %v2901_v10 }
 0x289   : > { %v2125_v14 = vadd.f32 %v2903_v38, %v1964_v16 }
 0x28b   : > { %v2676_v41 = vpack.c.bf16 %v2125_v14, %v2122_v31 }
 0x28d   : > { %2744 = vst [vmem:[%s4741_s10 + $0x10] sm:$0xff] %v2676_v41  }
 0x28e   : > { %v2792_v58 = vpop.f32.mrb[76].mxu0 }
 0x28f   : > { %v2904_v22 = vpop.f32.mrb[76].mxu1  ;;  %v2793_v36 = vpop.f32.mrb[77].mxu0 }
 0x290   : > { %v2794_v57 = vadd.f32 %v2793_v36, %v2792_v58  ;;  %v2905_v45 = vpop.f32.mrb[77].mxu1  ;;  %v2795_v7 = vpop.f32.mrb[78].mxu0 }
 0x291   : > { %v2906_v52 = vadd.f32 %v2905_v45, %v2904_v22  ;;  %v2907_v18 = vpop.f32.mrb[78].mxu1  ;;  %v2796_v12 = vpop.f32.mrb[79].mxu0 }
 0x292   : > { %v1969_v32 = vadd.f32 %v2794_v57, %v4735_v51  ;;  %v2797_v25 = vadd.f32 %v2796_v12, %v2795_v7  ;;  %v2908_v23 = vpop.f32.mrb[79].mxu1 }
 0x293   : > { %v2909_v48 = vadd.f32 %v2908_v23, %v2907_v18 }
 0x294   : > { %v2130_v4 = vadd.f32 %v2906_v52, %v1969_v32  ;;  %v1972_v2 = vadd.f32 %v2797_v25, %v4735_v51 }
 0x296   : > { %v2133_v42 = vadd.f32 %v2909_v48, %v1972_v2 }
 0x298   : > { %v2681_v47 = vpack.c.bf16 %v2133_v42, %v2130_v4 }
 0x299   : > { %v2798_v54 = vpop.f32.mrb[80].mxu0 }
 0x29a   : > { %v2910_v55 = vpop.f32.mrb[80].mxu1  ;;  %v2799_v24 = vpop.f32.mrb[81].mxu0  ;;  %2745 = vst [vmem:[%s4741_s10 + $0x18] sm:$0xff] %v2681_v47  }
 0x29b   : > { %v2800_v15 = vadd.f32 %v2799_v24, %v2798_v54  ;;  %v2911_v61 = vpop.f32.mrb[81].mxu1  ;;  %v2801_v40 = vpop.f32.mrb[82].mxu0 }
 0x29c   : > { %v2912_v39 = vadd.f32 %v2911_v61, %v2910_v55  ;;  %v2913_v59 = vpop.f32.mrb[82].mxu1  ;;  %v2802_v20 = vpop.f32.mrb[83].mxu0 }
 0x29d   : > { %v1977_v5 = vadd.f32 %v2800_v15, %v4735_v51  ;;  %v2803_v30 = vadd.f32 %v2802_v20, %v2801_v40  ;;  %v2914_v9 = vpop.f32.mrb[83].mxu1 }
 0x29e   : > { %v2915_v29 = vadd.f32 %v2914_v9, %v2913_v59 }
 0x29f   : > { %v2138_v56 = vadd.f32 %v2912_v39, %v1977_v5  ;;  %v1980_v35 = vadd.f32 %v2803_v30, %v4735_v51 }
 0x2a1   : > { %v2141_v8 = vadd.f32 %v2915_v29, %v1980_v35 }
 0x2a3   : > { %v2686_v60 = vpack.c.bf16 %v2141_v8, %v2138_v56 }
 0x2a5   : > { %2746 = vst [vmem:[%s4741_s10 + $0x20] sm:$0xff] %v2686_v60   ;;  %v2804_v50 = vpop.f32.mrb[84].mxu0 }
 0x2a6   : > { %v2805_v27 = vpop.f32.mrb[85].mxu0 }
 0x2a7   : > { %v2806_v6 = vadd.f32 %v2805_v27, %v2804_v50  ;;  %v2807_v53 = vpop.f32.mrb[86].mxu0 }
 0x2a8   : > { %v2808_v1 = vpop.f32.mrb[87].mxu0 }
 0x2a9   : > { %v2809_v17 = vadd.f32 %v2808_v1, %v2807_v53  ;;  %v1985_v11 = vadd.f32 %v2806_v6, %v4735_v51 }
 0x2ab   : > { %v1988_v49 = vadd.f32 %v2809_v17, %v4735_v51 }
 0x2ac   : > { %v2916_v43 = vpop.f32.mrb[84].mxu1 }
 0x2ad   : > { %v2917_v13 = vpop.f32.mrb[85].mxu1 }
 0x2ae   : > { %v2918_v44 = vadd.f32 %v2917_v13, %v2916_v43  ;;  %v2919_v62 = vpop.f32.mrb[86].mxu1 }
 0x2af   : > { %v2920_v46 = vpop.f32.mrb[87].mxu1 }
 0x2b0   : > { %v2146_v0 = vadd.f32 %v2918_v44, %v1985_v11  ;;  %v2921_v37 = vadd.f32 %v2920_v46, %v2919_v62 }
 0x2b2   : > { %v2149_v28 = vadd.f32 %v2921_v37, %v1988_v49  ;;  %v2810_v19 = vpop.f32.mrb[88].mxu0 }
 0x2b3   : > { %v2811_v26 = vpop.f32.mrb[89].mxu0 }
 0x2b4   : > { %v2691_v21 = vpack.c.bf16 %v2149_v28, %v2146_v0  ;;  %v2812_v3 = vadd.f32 %v2811_v26, %v2810_v19  ;;  %v2813_v10 = vpop.f32.mrb[90].mxu0 }
 0x2b5   : > { %v2922_v33 = vpop.f32.mrb[88].mxu1  ;;  %v2814_v34 = vpop.f32.mrb[91].mxu0 }
 0x2b6   : > { %2747 = vst [vmem:[%s4741_s10 + $0x28] sm:$0xff] %v2691_v21   ;;  %v2923_v63 = vpop.f32.mrb[89].mxu1  ;;  %v1993_v31 = vadd.f32 %v2812_v3, %v4735_v51  ;;  %v2815_v14 = vadd.f32 %v2814_v34, %v2813_v10 }
 0x2b7   : > { %v2924_v16 = vadd.f32 %v2923_v63, %v2922_v33  ;;  %v2925_v38 = vpop.f32.mrb[90].mxu1 }
 0x2b8   : > { %v2926_v41 = vpop.f32.mrb[91].mxu1  ;;  %v1996_v22 = vadd.f32 %v2815_v14, %v4735_v51 }
 0x2b9   : > { %v2154_v58 = vadd.f32 %v2924_v16, %v1993_v31  ;;  %v2927_v36 = vadd.f32 %v2926_v41, %v2925_v38 }
 0x2bb   : > { %v2157_v57 = vadd.f32 %v2927_v36, %v1996_v22 }
 0x2bd   : > { %v2696_v45 = vpack.c.bf16 %v2157_v57, %v2154_v58  ;;  %v2816_v7 = vpop.f32.mrb[92].mxu0 }
 0x2be   : > { %v2817_v52 = vpop.f32.mrb[93].mxu0 }
 0x2bf   : > { %2748 = vst [vmem:[%s4741_s10 + $0x30] sm:$0xff] %v2696_v45   ;;  %v2818_v18 = vadd.f32 %v2817_v52, %v2816_v7  ;;  %v2819_v12 = vpop.f32.mrb[94].mxu0 }
 0x2c0   : > { %v2820_v32 = vpop.f32.mrb[95].mxu0 }
 0x2c1   : > { %v2821_v25 = vadd.f32 %v2820_v32, %v2819_v12  ;;  %v2001_v48 = vadd.f32 %v2818_v18, %v4735_v51 }
 0x2c3   : > { %v2928_v23 = vpop.f32.mrb[92].mxu1  ;;  %v2004_v47 = vadd.f32 %v2821_v25, %v4735_v51 }
 0x2c4   : > { %v2929_v4 = vpop.f32.mrb[93].mxu1 }
 0x2c5   : > { %v2930_v2 = vadd.f32 %v2929_v4, %v2928_v23  ;;  %v2931_v42 = vpop.f32.mrb[94].mxu1 }
 0x2c6   : > { %v2932_v54 = vpop.f32.mrb[95].mxu1 }
 0x2c7   : > { %v2162_v55 = vadd.f32 %v2930_v2, %v2001_v48  ;;  %v2933_v24 = vadd.f32 %v2932_v54, %v2931_v42 }
 0x2c9   : > { %v2165_v15 = vadd.f32 %v2933_v24, %v2004_v47 }
 0x2cb   : > { %v2701_v61 = vpack.c.bf16 %v2165_v15, %v2162_v55  ;;  %v2822_v40 = vpop.f32.mrb[96].mxu0 }
 0x2cc   : > { %v2823_v39 = vpop.f32.mrb[97].mxu0 }
 0x2cd   : > { %2749 = vst [vmem:[%s4741_s10 + $0x38] sm:$0xff] %v2701_v61   ;;  %v2824_v59 = vadd.f32 %v2823_v39, %v2822_v40  ;;  %v2825_v20 = vpop.f32.mrb[98].mxu0 }
 0x2ce   : > { %v2934_v5 = vpop.f32.mrb[96].mxu1  ;;  %v2826_v30 = vpop.f32.mrb[99].mxu0 }
 0x2cf   : > { %v2009_v9 = vadd.f32 %v2824_v59, %v4735_v51  ;;  %v2935_v29 = vpop.f32.mrb[97].mxu1  ;;  %v2827_v56 = vadd.f32 %v2826_v30, %v2825_v20 }
 0x2d0   : > { %v2936_v35 = vadd.f32 %v2935_v29, %v2934_v5  ;;  %v2937_v8 = vpop.f32.mrb[98].mxu1 }
 0x2d1   : > { %v2012_v60 = vadd.f32 %v2827_v56, %v4735_v51  ;;  %v2938_v50 = vpop.f32.mrb[99].mxu1 }
 0x2d2   : > { %v2170_v27 = vadd.f32 %v2936_v35, %v2009_v9  ;;  %v2939_v6 = vadd.f32 %v2938_v50, %v2937_v8 }
 0x2d4   : > { %v2173_v53 = vadd.f32 %v2939_v6, %v2012_v60 }
 0x2d6   : > { %v2706_v1 = vpack.c.bf16 %v2173_v53, %v2170_v27 }
 0x2d7   : > { %v2828_v17 = vpop.f32.mrb[100].mxu0 }
 0x2d8   : > { %v2829_v43 = vpop.f32.mrb[101].mxu0  ;;  %2750 = vst [vmem:[%s4741_s10 + $0x40] sm:$0xff] %v2706_v1  }
 0x2d9   : > { %v2830_v11 = vadd.f32 %v2829_v43, %v2828_v17  ;;  %v2831_v13 = vpop.f32.mrb[102].mxu0 }
 0x2da   : > { %v2940_v44 = vpop.f32.mrb[100].mxu1  ;;  %v2832_v62 = vpop.f32.mrb[103].mxu0 }
 0x2db   : > { %v2017_v49 = vadd.f32 %v2830_v11, %v4735_v51  ;;  %v2941_v46 = vpop.f32.mrb[101].mxu1  ;;  %v2833_v0 = vadd.f32 %v2832_v62, %v2831_v13 }
 0x2dc   : > { %v2942_v37 = vadd.f32 %v2941_v46, %v2940_v44  ;;  %v2943_v28 = vpop.f32.mrb[102].mxu1 }
 0x2dd   : > { %v2020_v21 = vadd.f32 %v2833_v0, %v4735_v51  ;;  %v2944_v19 = vpop.f32.mrb[103].mxu1 }
 0x2de   : > { %v2178_v26 = vadd.f32 %v2942_v37, %v2017_v49  ;;  %v2945_v33 = vadd.f32 %v2944_v19, %v2943_v28 }
 0x2e0   : > { %v2181_v3 = vadd.f32 %v2945_v33, %v2020_v21 }
 0x2e2   : > { %v2711_v10 = vpack.c.bf16 %v2181_v3, %v2178_v26 }
 0x2e4   : > { %v2834_v63 = vpop.f32.mrb[104].mxu0  ;;  %2751 = vst [vmem:[%s4741_s10 + $0x48] sm:$0xff] %v2711_v10  }
 0x2e5   : > { %v2835_v34 = vpop.f32.mrb[105].mxu0 }
 0x2e6   : > { %v2836_v31 = vadd.f32 %v2835_v34, %v2834_v63  ;;  %v2837_v16 = vpop.f32.mrb[106].mxu0 }
 0x2e7   : > { %v2838_v38 = vpop.f32.mrb[107].mxu0  ;;  %v2946_v41 = vpop.f32.mrb[104].mxu1 }
 0x2e8   : > { %v2839_v14 = vadd.f32 %v2838_v38, %v2837_v16  ;;  %v2025_v58 = vadd.f32 %v2836_v31, %v4735_v51  ;;  %v2947_v22 = vpop.f32.mrb[105].mxu1 }
 0x2e9   : > { %v2948_v36 = vadd.f32 %v2947_v22, %v2946_v41  ;;  %v2949_v57 = vpop.f32.mrb[106].mxu1 }
 0x2ea   : > { %v2028_v45 = vadd.f32 %v2839_v14, %v4735_v51  ;;  %v2950_v7 = vpop.f32.mrb[107].mxu1 }
 0x2eb   : > { %v2186_v52 = vadd.f32 %v2948_v36, %v2025_v58  ;;  %v2951_v18 = vadd.f32 %v2950_v7, %v2949_v57 }
 0x2ed   : > { %v2189_v12 = vadd.f32 %v2951_v18, %v2028_v45 }
 0x2ef   : > { %v2716_v32 = vpack.c.bf16 %v2189_v12, %v2186_v52 }
 0x2f0   : > { %v2840_v25 = vpop.f32.mrb[108].mxu0 }
 0x2f1   : > { %v2841_v23 = vpop.f32.mrb[109].mxu0  ;;  %2752 = vst [vmem:[%s4741_s10 + $0x50] sm:$0xff] %v2716_v32  }
 0x2f2   : > { %v2842_v48 = vadd.f32 %v2841_v23, %v2840_v25  ;;  %v2843_v4 = vpop.f32.mrb[110].mxu0 }
 0x2f3   : > { %v2844_v2 = vpop.f32.mrb[111].mxu0 }
 0x2f4   : > { %v2845_v42 = vadd.f32 %v2844_v2, %v2843_v4  ;;  %v2033_v54 = vadd.f32 %v2842_v48, %v4735_v51 }
 0x2f5   : > { %v2952_v47 = vpop.f32.mrb[108].mxu1 }
 0x2f6   : > { %v2953_v55 = vpop.f32.mrb[109].mxu1  ;;  %v2036_v61 = vadd.f32 %v2845_v42, %v4735_v51 }
 0x2f7   : > { %v2954_v24 = vadd.f32 %v2953_v55, %v2952_v47  ;;  %v2955_v15 = vpop.f32.mrb[110].mxu1 }
 0x2f8   : > { %v2956_v40 = vpop.f32.mrb[111].mxu1  ;;  %v2846_v39 = vpop.f32.mrb[112].mxu0 }
 0x2f9   : > { %v2194_v59 = vadd.f32 %v2954_v24, %v2033_v54  ;;  %v2957_v20 = vadd.f32 %v2956_v40, %v2955_v15  ;;  %v2847_v5 = vpop.f32.mrb[113].mxu0 }
 0x2fa   : > { %v2848_v30 = vadd.f32 %v2847_v5, %v2846_v39  ;;  %v2849_v9 = vpop.f32.mrb[114].mxu0 }
 0x2fb   : > { %v2197_v29 = vadd.f32 %v2957_v20, %v2036_v61  ;;  %v2850_v56 = vpop.f32.mrb[115].mxu0 }
 0x2fc   : > { %v2851_v35 = vadd.f32 %v2850_v56, %v2849_v9  ;;  %v2041_v50 = vadd.f32 %v2848_v30, %v4735_v51 }
 0x2fd   : > { %v2721_v8 = vpack.c.bf16 %v2197_v29, %v2194_v59  ;;  %v2958_v60 = vpop.f32.mrb[112].mxu1 }
 0x2fe   : > { %v2959_v27 = vpop.f32.mrb[113].mxu1  ;;  %v2044_v1 = vadd.f32 %v2851_v35, %v4735_v51 }
 0x2ff   : > { %2753 = vst [vmem:[%s4741_s10 + $0x58] sm:$0xff] %v2721_v8   ;;  %v2960_v6 = vadd.f32 %v2959_v27, %v2958_v60  ;;  %v2961_v53 = vpop.f32.mrb[114].mxu1 }
 0x300   : > { %v2962_v17 = vpop.f32.mrb[115].mxu1  ;;  %v2852_v43 = vpop.f32.mrb[116].mxu0 }
 0x301   : > { %v2202_v11 = vadd.f32 %v2960_v6, %v2041_v50  ;;  %v2963_v13 = vadd.f32 %v2962_v17, %v2961_v53  ;;  %v2853_v44 = vpop.f32.mrb[117].mxu0 }
 0x302   : > { %v2854_v62 = vadd.f32 %v2853_v44, %v2852_v43  ;;  %v2855_v49 = vpop.f32.mrb[118].mxu0 }
 0x303   : > { %v2205_v46 = vadd.f32 %v2963_v13, %v2044_v1  ;;  %v2856_v0 = vpop.f32.mrb[119].mxu0 }
 0x304   : > { %v2857_v37 = vadd.f32 %v2856_v0, %v2855_v49  ;;  %v2049_v19 = vadd.f32 %v2854_v62, %v4735_v51 }
 0x305   : > { %v2726_v28 = vpack.c.bf16 %v2205_v46, %v2202_v11  ;;  %v2964_v21 = vpop.f32.mrb[116].mxu1 }
 0x306   : > { %v2965_v26 = vpop.f32.mrb[117].mxu1  ;;  %v2052_v10 = vadd.f32 %v2857_v37, %v4735_v51 }
 0x307   : > { %2754 = vst [vmem:[%s4741_s10 + $0x60] sm:$0xff] %v2726_v28   ;;  %v2966_v33 = vadd.f32 %v2965_v26, %v2964_v21  ;;  %v2967_v3 = vpop.f32.mrb[118].mxu1 }
 0x308   : > { %v2968_v63 = vpop.f32.mrb[119].mxu1  ;;  %v2858_v34 = vpop.f32.mrb[120].mxu0 }
 0x309   : > { %v2210_v31 = vadd.f32 %v2966_v33, %v2049_v19  ;;  %v2969_v16 = vadd.f32 %v2968_v63, %v2967_v3  ;;  %v2859_v38 = vpop.f32.mrb[121].mxu0 }
 0x30a   : > { %v2860_v14 = vadd.f32 %v2859_v38, %v2858_v34  ;;  %v2861_v41 = vpop.f32.mrb[122].mxu0 }
 0x30b   : > { %v2213_v58 = vadd.f32 %v2969_v16, %v2052_v10  ;;  %v2862_v22 = vpop.f32.mrb[123].mxu0 }
 0x30c   : > { %v2863_v36 = vadd.f32 %v2862_v22, %v2861_v41  ;;  %v2057_v7 = vadd.f32 %v2860_v14, %v4735_v51 }
 0x30d   : > { %v2731_v57 = vpack.c.bf16 %v2213_v58, %v2210_v31  ;;  %v2970_v45 = vpop.f32.mrb[120].mxu1 }
 0x30e   : > { %v2971_v52 = vpop.f32.mrb[121].mxu1  ;;  %v2060_v32 = vadd.f32 %v2863_v36, %v4735_v51 }
 0x30f   : > { %2755 = vst [vmem:[%s4741_s10 + $0x68] sm:$0xff] %v2731_v57   ;;  %v2972_v18 = vadd.f32 %v2971_v52, %v2970_v45  ;;  %v2973_v12 = vpop.f32.mrb[122].mxu1 }
 0x310   : > { %v2974_v25 = vpop.f32.mrb[123].mxu1  ;;  %v2864_v23 = vpop.f32.mrb[124].mxu0 }
 0x311   : > { %v2218_v48 = vadd.f32 %v2972_v18, %v2057_v7  ;;  %v2975_v4 = vadd.f32 %v2974_v25, %v2973_v12  ;;  %v2865_v2 = vpop.f32.mrb[125].mxu0 }
 0x312   : > { %v2866_v42 = vadd.f32 %v2865_v2, %v2864_v23  ;;  %v2867_v47 = vpop.f32.mrb[126].mxu0 }
 0x313   : > { %v2221_v54 = vadd.f32 %v2975_v4, %v2060_v32  ;;  %v2868_v55 = vpop.f32.mrb[127].mxu0 }
 0x314   : > { %v2869_v24 = vadd.f32 %v2868_v55, %v2867_v47  ;;  %v2065_v40 = vadd.f32 %v2866_v42, %v4735_v51 }
 0x315   : > { %v2736_v15 = vpack.c.bf16 %v2221_v54, %v2218_v48  ;;  %v2976_v61 = vpop.f32.mrb[124].mxu1 }
 0x316   : > { %v2977_v39 = vpop.f32.mrb[125].mxu1  ;;  %v2068_v5 = vadd.f32 %v2869_v24, %v4735_v51 }
 0x317   : > { %2756 = vst [vmem:[%s4741_s10 + $0x70] sm:$0xff] %v2736_v15   ;;  %v2978_v59 = vadd.f32 %v2977_v39, %v2976_v61  ;;  %v2979_v20 = vpop.f32.mrb[126].mxu1 }
 0x318   : > { %v2980_v30 = vpop.f32.mrb[127].mxu1 }
 0x319   : > { %v2226_v9 = vadd.f32 %v2978_v59, %v2065_v40  ;;  %v2981_v29 = vadd.f32 %v2980_v30, %v2979_v20 }
 0x31b   : > { %v2229_v56 = vadd.f32 %v2981_v29, %v2068_v5 }
 0x31d   : > { %v2741_v35 = vpack.c.bf16 %v2229_v56, %v2226_v9 }
 0x31f   : > { %2757 = vst [vmem:[%s4741_s10 + $0x78] sm:$0xff] %v2741_v35  }
 0x320   : > { %3379 = shalt.err (!%p3376_p2)
}
 0x321   : > { %s3380_s14 = scalar_lea.hbm %s4793_s11, 2048  ;;  %s3384_s12 = scalar_lea.hbm %s4845_s5, 4096 }
 0x322   : > { %p3381_p13 = scmp.ne.s32.totalorder %s4793_s11, %s3380_s14  ;;  %p3385_p4 = scmp.lt.u32.totalorder %s4793_s11, %s4845_s5 }
 0x323   : > { %p3386_p7 = scmp.lt.u32.totalorder %s3384_s12, %s3380_s14  ;;  %p3388_p11 = scmp.lt.u32.totalorder %s3380_s14, %s4793_s11 }
 0x324   : > { %p3382_p6 = pnand %p3381_p13, %p5005_p0 }
 0x325   : > { %p3387_p8 = por %p3386_p7, %p3385_p4 }
 0x326   : > { %p3383_p10 = pneg %p3382_p6 }
 0x327   : > { %p3389_p1 = por %p3388_p11, %p3387_p8 }
 0x329   : > { %p3390_p3 = pnand %p3389_p1, %p3383_p10 }
 0x32b   : > { %3393 = shalt.err (!%p3390_p3)
}
 0x32c   : > { %s3447_s28 = smov 64   ;;  %s3448_s9 = smov 4  }
 0x32d   : > { %2992 = dma.vmem_to_hbm [thread:$0]  (%p5005_p0), %s4795_s15, 2048, %s4793_s11, %s2393_s23, %s3447_s28, %s3447_s28, %s3448_s9  }
 0x32e PF: > { %s2421_s30 = sand.u32 1, %s3424_s18   ;;  %p5006_p5 = scmp.ne.s32.totalorder %s4894_s25, 0 }
 0x32f   : > { %p5007_p9 = scmp.ge.s32.totalorder %s3436_s21, 2  ;;  %s2422_s7 = scalar_lea.sflag [#allocation4], %s2421_s30 }
 0x331   : > { %p3006_p12 = pnand %p5007_p9, %p5006_p5 }
 0x333   : > { %3419 = dma.done.wait (!%p3006_p12), %s2422_s7, 2048  }
 0x334   : > { %3421 = vsyncadd (!%p3006_p12), %s2422_s7, 4294965248  ;;  %p19_p2 = scmp.ge.s32.totalorder %s3592_s16, 4   ;;  %s5008_s18 = smov %s3428_s19 }
 0x335   : > { %s5009_s19 = smov %s3432_s20  ;;  %s5010_s20 = smov %s3601_s27 }
 0x336   : > { %s5011_s21 = smov %s3592_s16  ;;  %21 = sbr.rel (!%p19_p2) target bundleno = 6 (0x6), region = 93 }
 0x33d   :  { %2427 = vsyncpa [#allocation3], 1 }
 0x33e   :  { %2429 = vsyncpa [#allocation3 + $0x1], 1 }
 0x33f   :  { %2430 = vsyncpa [#allocation6], 1 }
 0x340   :  { %2431 = vsyncpa [#allocation4], 1 }
 0x341   :  { %2433 = vsyncpa [#allocation4 + $0x1], 1 }

</bundles_post_ra>
